<compile_context>
chip_gen: v7x
topology: tpu7x:2x2x1
jax: 0.10.0
libtpu: 0.0.40
codegen_flags: <defaults>
</compile_context>

<pallas_src>
from functools import partial

import jax
import jax.numpy as jnp
from jax.experimental import pallas as pl
from jax.experimental.pallas import tpu as pltpu


# ---------------------------------------------------------------------------
# Fused ASPP kernel (one grid step == one image)
# ---------------------------------------------------------------------------
def aspp_kernel(x_ref, w11_ref, w15_ref, w3_ref, shift_ref, o_ref, acc_ref,
                *, rates, w_padded):
    # x_ref    : (1, Cin, Hp*Wp)     VMEM  zero-padded, flattened image
    # w11_ref  : (Cout, Cin)         VMEM  conv1x1_1 weights (BN scale folded)
    # w15_ref  : (Cout, Cin)         VMEM  conv1x1_5 weights (BN scale folded)
    # w3_ref   : (27, Cout, Cin)     VMEM  3 rates x 9 taps of the dilated 3x3
    #                                      convs (BN scale folded), tap order
    #                                      index = rate*9 + kh*3 + kw
    # shift_ref: (5*Cout, 1)         VMEM  folded conv-bias + BN shift
    # o_ref    : (1, 5*Cout, Hp*Wp)  VMEM  output slab (padding stripped later)
    # acc_ref  : (Cout, Hp*Wp)       VMEM  scratch accumulator
    cout = w11_ref.shape[0]
    hwp = x_ref.shape[2]                 # Hp * Wp (flattened padded extent)

    x = x_ref[0]                         # (Cin, Hp*Wp), stays vreg/VMEM resident

    def finish(branch, y):
        shift = shift_ref[branch * cout:(branch + 1) * cout, :]       # (Cout, 1)
        o_ref[0, branch * cout:(branch + 1) * cout, :] = jnp.maximum(y + shift, 0.0)

    # Branch 0: 1x1 conv -> single MXU matmul.
    finish(0, jnp.dot(w11_ref[...], x, preferred_element_type=jnp.float32))

    # Branches 1..3: dilated 3x3 convs, each as 9 shifted-slab MXU matmuls.
    for ri, r in enumerate(rates):
        acc_ref[...] = jnp.zeros_like(acc_ref)
        for kh in range(3):
            for kw in range(3):
                tap = ri * 9 + kh * 3 + kw
                y = jnp.dot(w3_ref[tap], x,
                            preferred_element_type=jnp.float32)       # (Cout, Hp*Wp)
                # Flat shift for this tap; clipping the range at the ends of the
                # padded image exactly reproduces the conv's zero padding.
                s = (kh - 1) * r * w_padded + (kw - 1) * r
                lo = max(0, -s)
                hi = hwp - max(0, s)
                acc_ref[:, lo:hi] += y[:, lo + s:hi + s]
        finish(1 + ri, acc_ref[...])

    # Branch 4: 1x1 conv -> single MXU matmul.
    finish(4, jnp.dot(w15_ref[...], x, preferred_element_type=jnp.float32))


# ---------------------------------------------------------------------------
# Wrapper: BN folding, weight re-layout, padding/flattening, pallas_call
# ---------------------------------------------------------------------------
def aspp_forward(x, params, rates):
    assert len(rates) == 3
    N, Cin, H, W = x.shape
    Cout = params["w1"].shape[0]
    R = max(rates)
    Hp, Wp = H + 2 * R, W + 2 * R
    HWp = Hp * Wp
    eps = 1e-5

    # Fold BatchNorm (inference mode) into per-channel scale / shift; the scale
    # is folded into the conv weights, the conv bias into the shift.
    s_all = params["gamma"] / jnp.sqrt(params["rv"] + eps)            # (5*Cout,)
    bias_cat = jnp.concatenate([params["b1"], params["b2"], params["b3"],
                                params["b4"], params["b5"]])
    shift_all = params["beta"] + (bias_cat - params["rm"]) * s_all    # (5*Cout,)

    def branch_scale(b):
        return s_all[b * Cout:(b + 1) * Cout]

    w11 = params["w1"][:, :, 0, 0] * branch_scale(0)[:, None]         # (Cout, Cin)
    w15 = params["w5"][:, :, 0, 0] * branch_scale(4)[:, None]         # (Cout, Cin)

    w3_stacks = []
    for ri, key in enumerate(("w2", "w3", "w4")):
        w = params[key] * branch_scale(1 + ri)[:, None, None, None]   # (Cout,Cin,3,3)
        w3_stacks.append(jnp.transpose(w, (2, 3, 0, 1)).reshape(9, Cout, Cin))
    w3_all = jnp.concatenate(w3_stacks, axis=0)                       # (27, Cout, Cin)

    # Zero-pad by R on each spatial side and flatten -> lane-dense (Cin, Hp*Wp).
    xpf = jnp.pad(x, ((0, 0), (0, 0), (R, R), (R, R))).reshape(N, Cin, HWp)
    shift2d = shift_all.reshape(5 * Cout, 1)

    kernel = partial(aspp_kernel, rates=tuple(int(r) for r in rates), w_padded=Wp)

    out_flat = pl.pallas_call(
        kernel,
        out_shape=jax.ShapeDtypeStruct((N, 5 * Cout, HWp), jnp.float32),
        grid_spec=pltpu.PrefetchScalarGridSpec(
            num_scalar_prefetch=0,
            grid=(N,),
            in_specs=[
                pl.BlockSpec((1, Cin, HWp), lambda n: (n, 0, 0)),      # image
                pl.BlockSpec((Cout, Cin), lambda n: (0, 0)),           # w 1x1 #1
                pl.BlockSpec((Cout, Cin), lambda n: (0, 0)),           # w 1x1 #5
                pl.BlockSpec((27, Cout, Cin), lambda n: (0, 0, 0)),    # 3x3 taps
                pl.BlockSpec((5 * Cout, 1), lambda n: (0, 0)),         # shift
            ],
            out_specs=pl.BlockSpec((1, 5 * Cout, HWp), lambda n: (n, 0, 0)),
            scratch_shapes=[pltpu.VMEM((Cout, HWp), jnp.float32)],
        ),
        # Batch images are independent -> shard across v7x's two TensorCores.
        compiler_params=pltpu.CompilerParams(dimension_semantics=("parallel",)),
    )(xpf, w11, w15, w3_all, shift2d)

    # Strip the spatial padding (wrapper-side layout plumbing only).
    out = out_flat.reshape(N, 5 * Cout, Hp, Wp)[:, :, R:R + H, R:R + W]
    return out


# ---------------------------------------------------------------------------
# Pure-JAX reference (for correctness check) and parameter init
# ---------------------------------------------------------------------------
def aspp_reference(x, params, rates):
    dn = ("NCHW", "OIHW", "NCHW")

    def conv(w, b, pad, dil):
        y = jax.lax.conv_general_dilated(
            x, w, window_strides=(1, 1),
            padding=((pad, pad), (pad, pad)),
            rhs_dilation=(dil, dil),
            dimension_numbers=dn)
        return y + b[None, :, None, None]

    z = jnp.concatenate([
        conv(params["w1"], params["b1"], 0, 1),
        conv(params["w2"], params["b2"], rates[0], rates[0]),
        conv(params["w3"], params["b3"], rates[1], rates[1]),
        conv(params["w4"], params["b4"], rates[2], rates[2]),
        conv(params["w5"], params["b5"], 0, 1),
    ], axis=1)
    s = params["gamma"] / jnp.sqrt(params["rv"] + 1e-5)
    z = (z - params["rm"][None, :, None, None]) * s[None, :, None, None] \
        + params["beta"][None, :, None, None]
    return jnp.maximum(z, 0.0)


def init_params(key, in_channels, out_channels):
    ks = jax.random.split(key, 14)

    def rnd(k, shape, scale=0.1):
        return scale * jax.random.normal(k, shape, jnp.float32)

    c5 = 5 * out_channels
    return {
        "w1": rnd(ks[0], (out_channels, in_channels, 1, 1)),
        "b1": rnd(ks[1], (out_channels,)),
        "w2": rnd(ks[2], (out_channels, in_channels, 3, 3)),
        "b2": rnd(ks[3], (out_channels,)),
        "w3": rnd(ks[4], (out_channels, in_channels, 3, 3)),
        "b3": rnd(ks[5], (out_channels,)),
        "w4": rnd(ks[6], (out_channels, in_channels, 3, 3)),
        "b4": rnd(ks[7], (out_channels,)),
        "w5": rnd(ks[8], (out_channels, in_channels, 1, 1)),
        "b5": rnd(ks[9], (out_channels,)),
        "gamma": 1.0 + rnd(ks[10], (c5,)),
        "beta": rnd(ks[11], (c5,)),
        "rm": rnd(ks[12], (c5,)),
        "rv": 1.0 + jnp.abs(rnd(ks[13], (c5,))),
    }


if __name__ == "__main__":
    key = jax.random.PRNGKey(0)
    in_channels, out_channels = 8, 8
    rates = (1, 2, 3)
    N, H, W = 2, 16, 16

    k_param, k_x = jax.random.split(key)
    params = init_params(k_param, in_channels, out_channels)
    x = jax.random.normal(k_x, (N, in_channels, H, W), jnp.float32)

    fwd = jax.jit(partial(aspp_forward, rates=rates))
    out = jax.block_until_ready(fwd(x, params))

    assert out.shape == (N, 5 * out_channels, H, W), out.shape
    assert bool(jnp.all(jnp.isfinite(out)))

    # Correctness against a pure-JAX reference (tolerance accounts for default
    # MXU f32 matmul precision on TPU).
    ref = aspp_reference(x, params, rates)
    assert bool(jnp.allclose(out, ref, atol=5e-2, rtol=5e-2)), \
        float(jnp.max(jnp.abs(out - ref)))

    print("KERNEL_OK")
</pallas_src>

<mosaic_0001>
module attributes {stable_mosaic.version = 11 : i64} {
  func.func @aspp_kernel(%arg0: i32, %arg1: memref<1x8x484xf32, #tpu.memory_space<vmem>>, %arg2: memref<8x8xf32, #tpu.memory_space<vmem>>, %arg3: memref<8x8xf32, #tpu.memory_space<vmem>>, %arg4: memref<27x8x8xf32, #tpu.memory_space<vmem>>, %arg5: memref<40x1xf32, #tpu.memory_space<vmem>>, %arg6: memref<1x40x484xf32, #tpu.memory_space<vmem>>, %arg7: memref<8x484xf32, #tpu.memory_space<vmem>>) attributes {dimension_semantics = [#tpu.dimension_semantics<parallel>], iteration_bounds = array<i64: 2>, scalar_prefetch = 0 : i64, scratch_operands = 1 : i64, tpu.core_type = #tpu.core_type<tc>, window_params = [{transform_indices = @transform_0, window_bounds = array<i64: 1, 8, 484>}, {pipeline_mode = #tpu.pipeline_mode<synchronous>, transform_indices = @transform_1, window_bounds = array<i64: 8, 8>}, {pipeline_mode = #tpu.pipeline_mode<synchronous>, transform_indices = @transform_2, window_bounds = array<i64: 8, 8>}, {pipeline_mode = #tpu.pipeline_mode<synchronous>, transform_indices = @transform_3, window_bounds = array<i64: 27, 8, 8>}, {pipeline_mode = #tpu.pipeline_mode<synchronous>, transform_indices = @transform_4, window_bounds = array<i64: 40, 1>}, {transform_indices = @transform_5, window_bounds = array<i64: 1, 40, 484>}]} {
    %c0 = arith.constant 0 : index
    %c0_0 = arith.constant 0 : index
    %c0_1 = arith.constant 0 : index
    %0 = vector.load %arg1[%c0, %c0_0, %c0_1] : memref<1x8x484xf32, #tpu.memory_space<vmem>>, vector<1x8x484xf32>
    %1 = vector.shape_cast %0 : vector<1x8x484xf32> to vector<8x484xf32>
    %c0_2 = arith.constant 0 : index
    %c0_3 = arith.constant 0 : index
    %2 = vector.load %arg2[%c0_2, %c0_3] : memref<8x8xf32, #tpu.memory_space<vmem>>, vector<8x8xf32>
    %cst = arith.constant dense<0.000000e+00> : vector<8x484xf32>
    %3 = tpu.matmul %2, %1, %cst {dimension_numbers = #tpu.dot_dimension_numbers<[1], [0], [0], [1], [0, 0, 1, 1], [], []>} : vector<8x8xf32>, vector<8x484xf32>, vector<8x484xf32> -> vector<8x484xf32>
    %c0_4 = arith.constant 0 : index
    %c0_5 = arith.constant 0 : index
    %4 = vector.load %arg5[%c0_4, %c0_5] : memref<40x1xf32, #tpu.memory_space<vmem>>, vector<8x1xf32>
    %5 = vector.broadcast %4 : vector<8x1xf32> to vector<8x484xf32>
    %6 = arith.addf %3, %5 : vector<8x484xf32>
    %cst_6 = arith.constant 0.000000e+00 : f32
    %7 = vector.broadcast %cst_6 : f32 to vector<8x484xf32>
    %8 = arith.maximumf %6, %7 : vector<8x484xf32>
    %c0_7 = arith.constant 0 : index
    %c0_8 = arith.constant 0 : index
    %c0_9 = arith.constant 0 : index
    %9 = vector.load %arg6[%c0_7, %c0_8, %c0_9] : memref<1x40x484xf32, #tpu.memory_space<vmem>>, vector<1x8x484xf32>
    %10 = vector.shape_cast %9 : vector<1x8x484xf32> to vector<8x484xf32>
    %11 = vector.shape_cast %8 : vector<8x484xf32> to vector<1x8x484xf32>
    tpu.vector_store %arg6[%c0_7, %c0_8, %c0_9], %11 {strides = array<i32>} : memref<1x40x484xf32, #tpu.memory_space<vmem>>, vector<1x8x484xf32>,
    %cst_10 = arith.constant 0.000000e+00 : f32
    %12 = vector.broadcast %cst_10 : f32 to vector<8x484xf32>
    %c0_11 = arith.constant 0 : index
    %c0_12 = arith.constant 0 : index
    %13 = vector.load %arg7[%c0_11, %c0_12] : memref<8x484xf32, #tpu.memory_space<vmem>>, vector<8x484xf32>
    tpu.vector_store %arg7[%c0_11, %c0_12], %12 {strides = array<i32>} : memref<8x484xf32, #tpu.memory_space<vmem>>, vector<8x484xf32>,
    %c0_13 = arith.constant 0 : index
    %c0_14 = arith.constant 0 : index
    %c0_15 = arith.constant 0 : index
    %14 = vector.load %arg4[%c0_13, %c0_14, %c0_15] : memref<27x8x8xf32, #tpu.memory_space<vmem>>, vector<1x8x8xf32>
    %15 = vector.shape_cast %14 : vector<1x8x8xf32> to vector<8x8xf32>
    %cst_16 = arith.constant dense<0.000000e+00> : vector<8x484xf32>
    %16 = tpu.matmul %15, %1, %cst_16 {dimension_numbers = #tpu.dot_dimension_numbers<[1], [0], [0], [1], [0, 0, 1, 1], [], []>} : vector<8x8xf32>, vector<8x484xf32>, vector<8x484xf32> -> vector<8x484xf32>
    %c0_17 = arith.constant 0 : index
    %c23 = arith.constant 23 : index
    %17 = vector.load %arg7[%c0_17, %c23] : memref<8x484xf32, #tpu.memory_space<vmem>>, vector<8x461xf32>
    %18 = vector.extract_strided_slice %16 {offsets = [0, 0], sizes = [8, 461], strides = [1, 1]} : vector<8x484xf32> to vector<8x461xf32>
    %19 = arith.addf %17, %18 : vector<8x461xf32>
    %c0_18 = arith.constant 0 : index
    %c23_19 = arith.constant 23 : index
    %20 = vector.load %arg7[%c0_18, %c23_19] : memref<8x484xf32, #tpu.memory_space<vmem>>, vector<8x461xf32>
    tpu.vector_store %arg7[%c0_18, %c23_19], %19 {strides = array<i32>} : memref<8x484xf32, #tpu.memory_space<vmem>>, vector<8x461xf32>,
    %c1 = arith.constant 1 : index
    %c0_20 = arith.constant 0 : index
    %c0_21 = arith.constant 0 : index
    %21 = vector.load %arg4[%c1, %c0_20, %c0_21] : memref<27x8x8xf32, #tpu.memory_space<vmem>>, vector<1x8x8xf32>
    %22 = vector.shape_cast %21 : vector<1x8x8xf32> to vector<8x8xf32>
    %cst_22 = arith.constant dense<0.000000e+00> : vector<8x484xf32>
    %23 = tpu.matmul %22, %1, %cst_22 {dimension_numbers = #tpu.dot_dimension_numbers<[1], [0], [0], [1], [0, 0, 1, 1], [], []>} : vector<8x8xf32>, vector<8x484xf32>, vector<8x484xf32> -> vector<8x484xf32>
    %c0_23 = arith.constant 0 : index
    %c22 = arith.constant 22 : index
    %24 = vector.load %arg7[%c0_23, %c22] : memref<8x484xf32, #tpu.memory_space<vmem>>, vector<8x462xf32>
    %25 = vector.extract_strided_slice %23 {offsets = [0, 0], sizes = [8, 462], strides = [1, 1]} : vector<8x484xf32> to vector<8x462xf32>
    %26 = arith.addf %24, %25 : vector<8x462xf32>
    %c0_24 = arith.constant 0 : index
    %c22_25 = arith.constant 22 : index
    %27 = vector.load %arg7[%c0_24, %c22_25] : memref<8x484xf32, #tpu.memory_space<vmem>>, vector<8x462xf32>
    tpu.vector_store %arg7[%c0_24, %c22_25], %26 {strides = array<i32>} : memref<8x484xf32, #tpu.memory_space<vmem>>, vector<8x462xf32>,
    %c2 = arith.constant 2 : index
    %c0_26 = arith.constant 0 : index
    %c0_27 = arith.constant 0 : index
    %28 = vector.load %arg4[%c2, %c0_26, %c0_27] : memref<27x8x8xf32, #tpu.memory_space<vmem>>, vector<1x8x8xf32>
    %29 = vector.shape_cast %28 : vector<1x8x8xf32> to vector<8x8xf32>
    %cst_28 = arith.constant dense<0.000000e+00> : vector<8x484xf32>
    %30 = tpu.matmul %29, %1, %cst_28 {dimension_numbers = #tpu.dot_dimension_numbers<[1], [0], [0], [1], [0, 0, 1, 1], [], []>} : vector<8x8xf32>, vector<8x484xf32>, vector<8x484xf32> -> vector<8x484xf32>
    %c0_29 = arith.constant 0 : index
    %c21 = arith.constant 21 : index
    %31 = vector.load %arg7[%c0_29, %c21] : memref<8x484xf32, #tpu.memory_space<vmem>>, vector<8x463xf32>
    %32 = vector.extract_strided_slice %30 {offsets = [0, 0], sizes = [8, 463], strides = [1, 1]} : vector<8x484xf32> to vector<8x463xf32>
    %33 = arith.addf %31, %32 : vector<8x463xf32>
    %c0_30 = arith.constant 0 : index
    %c21_31 = arith.constant 21 : index
    %34 = vector.load %arg7[%c0_30, %c21_31] : memref<8x484xf32, #tpu.memory_space<vmem>>, vector<8x463xf32>
    tpu.vector_store %arg7[%c0_30, %c21_31], %33 {strides = array<i32>} : memref<8x484xf32, #tpu.memory_space<vmem>>, vector<8x463xf32>,
    %c3 = arith.constant 3 : index
    %c0_32 = arith.constant 0 : index
    %c0_33 = arith.constant 0 : index
    %35 = vector.load %arg4[%c3, %c0_32, %c0_33] : memref<27x8x8xf32, #tpu.memory_space<vmem>>, vector<1x8x8xf32>
    %36 = vector.shape_cast %35 : vector<1x8x8xf32> to vector<8x8xf32>
    %cst_34 = arith.constant dense<0.000000e+00> : vector<8x484xf32>
    %37 = tpu.matmul %36, %1, %cst_34 {dimension_numbers = #tpu.dot_dimension_numbers<[1], [0], [0], [1], [0, 0, 1, 1], [], []>} : vector<8x8xf32>, vector<8x484xf32>, vector<8x484xf32> -> vector<8x484xf32>
    %c0_35 = arith.constant 0 : index
    %c1_36 = arith.constant 1 : index
    %38 = vector.load %arg7[%c0_35, %c1_36] : memref<8x484xf32, #tpu.memory_space<vmem>>, vector<8x483xf32>
    %39 = vector.extract_strided_slice %37 {offsets = [0, 0], sizes = [8, 483], strides = [1, 1]} : vector<8x484xf32> to vector<8x483xf32>
    %40 = arith.addf %38, %39 : vector<8x483xf32>
    %c0_37 = arith.constant 0 : index
    %c1_38 = arith.constant 1 : index
    %41 = vector.load %arg7[%c0_37, %c1_38] : memref<8x484xf32, #tpu.memory_space<vmem>>, vector<8x483xf32>
    tpu.vector_store %arg7[%c0_37, %c1_38], %40 {strides = array<i32>} : memref<8x484xf32, #tpu.memory_space<vmem>>, vector<8x483xf32>,
    %c4 = arith.constant 4 : index
    %c0_39 = arith.constant 0 : index
    %c0_40 = arith.constant 0 : index
    %42 = vector.load %arg4[%c4, %c0_39, %c0_40] : memref<27x8x8xf32, #tpu.memory_space<vmem>>, vector<1x8x8xf32>
    %43 = vector.shape_cast %42 : vector<1x8x8xf32> to vector<8x8xf32>
    %cst_41 = arith.constant dense<0.000000e+00> : vector<8x484xf32>
    %44 = tpu.matmul %43, %1, %cst_41 {dimension_numbers = #tpu.dot_dimension_numbers<[1], [0], [0], [1], [0, 0, 1, 1], [], []>} : vector<8x8xf32>, vector<8x484xf32>, vector<8x484xf32> -> vector<8x484xf32>
    %c0_42 = arith.constant 0 : index
    %c0_43 = arith.constant 0 : index
    %45 = vector.load %arg7[%c0_42, %c0_43] : memref<8x484xf32, #tpu.memory_space<vmem>>, vector<8x484xf32>
    %46 = arith.addf %45, %44 : vector<8x484xf32>
    %c0_44 = arith.constant 0 : index
    %c0_45 = arith.constant 0 : index
    %47 = vector.load %arg7[%c0_44, %c0_45] : memref<8x484xf32, #tpu.memory_space<vmem>>, vector<8x484xf32>
    tpu.vector_store %arg7[%c0_44, %c0_45], %46 {strides = array<i32>} : memref<8x484xf32, #tpu.memory_space<vmem>>, vector<8x484xf32>,
    %c5 = arith.constant 5 : index
    %c0_46 = arith.constant 0 : index
    %c0_47 = arith.constant 0 : index
    %48 = vector.load %arg4[%c5, %c0_46, %c0_47] : memref<27x8x8xf32, #tpu.memory_space<vmem>>, vector<1x8x8xf32>
    %49 = vector.shape_cast %48 : vector<1x8x8xf32> to vector<8x8xf32>
    %cst_48 = arith.constant dense<0.000000e+00> : vector<8x484xf32>
    %50 = tpu.matmul %49, %1, %cst_48 {dimension_numbers = #tpu.dot_dimension_numbers<[1], [0], [0], [1], [0, 0, 1, 1], [], []>} : vector<8x8xf32>, vector<8x484xf32>, vector<8x484xf32> -> vector<8x484xf32>
    %c0_49 = arith.constant 0 : index
    %c0_50 = arith.constant 0 : index
    %51 = vector.load %arg7[%c0_49, %c0_50] : memref<8x484xf32, #tpu.memory_space<vmem>>, vector<8x483xf32>
    %52 = vector.extract_strided_slice %50 {offsets = [0, 1], sizes = [8, 483], strides = [1, 1]} : vector<8x484xf32> to vector<8x483xf32>
    %53 = arith.addf %51, %52 : vector<8x483xf32>
    %c0_51 = arith.constant 0 : index
    %c0_52 = arith.constant 0 : index
    %54 = vector.load %arg7[%c0_51, %c0_52] : memref<8x484xf32, #tpu.memory_space<vmem>>, vector<8x483xf32>
    tpu.vector_store %arg7[%c0_51, %c0_52], %53 {strides = array<i32>} : memref<8x484xf32, #tpu.memory_space<vmem>>, vector<8x483xf32>,
    %c6 = arith.constant 6 : index
    %c0_53 = arith.constant 0 : index
    %c0_54 = arith.constant 0 : index
    %55 = vector.load %arg4[%c6, %c0_53, %c0_54] : memref<27x8x8xf32, #tpu.memory_space<vmem>>, vector<1x8x8xf32>
    %56 = vector.shape_cast %55 : vector<1x8x8xf32> to vector<8x8xf32>
    %cst_55 = arith.constant dense<0.000000e+00> : vector<8x484xf32>
    %57 = tpu.matmul %56, %1, %cst_55 {dimension_numbers = #tpu.dot_dimension_numbers<[1], [0], [0], [1], [0, 0, 1, 1], [], []>} : vector<8x8xf32>, vector<8x484xf32>, vector<8x484xf32> -> vector<8x484xf32>
    %c0_56 = arith.constant 0 : index
    %c0_57 = arith.constant 0 : index
    %58 = vector.load %arg7[%c0_56, %c0_57] : memref<8x484xf32, #tpu.memory_space<vmem>>, vector<8x463xf32>
    %59 = vector.extract_strided_slice %57 {offsets = [0, 21], sizes = [8, 463], strides = [1, 1]} : vector<8x484xf32> to vector<8x463xf32>
    %60 = arith.addf %58, %59 : vector<8x463xf32>
    %c0_58 = arith.constant 0 : index
    %c0_59 = arith.constant 0 : index
    %61 = vector.load %arg7[%c0_58, %c0_59] : memref<8x484xf32, #tpu.memory_space<vmem>>, vector<8x463xf32>
    tpu.vector_store %arg7[%c0_58, %c0_59], %60 {strides = array<i32>} : memref<8x484xf32, #tpu.memory_space<vmem>>, vector<8x463xf32>,
    %c7 = arith.constant 7 : index
    %c0_60 = arith.constant 0 : index
    %c0_61 = arith.constant 0 : index
    %62 = vector.load %arg4[%c7, %c0_60, %c0_61] : memref<27x8x8xf32, #tpu.memory_space<vmem>>, vector<1x8x8xf32>
    %63 = vector.shape_cast %62 : vector<1x8x8xf32> to vector<8x8xf32>
    %cst_62 = arith.constant dense<0.000000e+00> : vector<8x484xf32>
    %64 = tpu.matmul %63, %1, %cst_62 {dimension_numbers = #tpu.dot_dimension_numbers<[1], [0], [0], [1], [0, 0, 1, 1], [], []>} : vector<8x8xf32>, vector<8x484xf32>, vector<8x484xf32> -> vector<8x484xf32>
    %c0_63 = arith.constant 0 : index
    %c0_64 = arith.constant 0 : index
    %65 = vector.load %arg7[%c0_63, %c0_64] : memref<8x484xf32, #tpu.memory_space<vmem>>, vector<8x462xf32>
    %66 = vector.extract_strided_slice %64 {offsets = [0, 22], sizes = [8, 462], strides = [1, 1]} : vector<8x484xf32> to vector<8x462xf32>
    %67 = arith.addf %65, %66 : vector<8x462xf32>
    %c0_65 = arith.constant 0 : index
    %c0_66 = arith.constant 0 : index
    %68 = vector.load %arg7[%c0_65, %c0_66] : memref<8x484xf32, #tpu.memory_space<vmem>>, vector<8x462xf32>
    tpu.vector_store %arg7[%c0_65, %c0_66], %67 {strides = array<i32>} : memref<8x484xf32, #tpu.memory_space<vmem>>, vector<8x462xf32>,
    %c8 = arith.constant 8 : index
    %c0_67 = arith.constant 0 : index
    %c0_68 = arith.constant 0 : index
    %69 = vector.load %arg4[%c8, %c0_67, %c0_68] : memref<27x8x8xf32, #tpu.memory_space<vmem>>, vector<1x8x8xf32>
    %70 = vector.shape_cast %69 : vector<1x8x8xf32> to vector<8x8xf32>
    %cst_69 = arith.constant dense<0.000000e+00> : vector<8x484xf32>
    %71 = tpu.matmul %70, %1, %cst_69 {dimension_numbers = #tpu.dot_dimension_numbers<[1], [0], [0], [1], [0, 0, 1, 1], [], []>} : vector<8x8xf32>, vector<8x484xf32>, vector<8x484xf32> -> vector<8x484xf32>
    %c0_70 = arith.constant 0 : index
    %c0_71 = arith.constant 0 : index
    %72 = vector.load %arg7[%c0_70, %c0_71] : memref<8x484xf32, #tpu.memory_space<vmem>>, vector<8x461xf32>
    %73 = vector.extract_strided_slice %71 {offsets = [0, 23], sizes = [8, 461], strides = [1, 1]} : vector<8x484xf32> to vector<8x461xf32>
    %74 = arith.addf %72, %73 : vector<8x461xf32>
    %c0_72 = arith.constant 0 : index
    %c0_73 = arith.constant 0 : index
    %75 = vector.load %arg7[%c0_72, %c0_73] : memref<8x484xf32, #tpu.memory_space<vmem>>, vector<8x461xf32>
    tpu.vector_store %arg7[%c0_72, %c0_73], %74 {strides = array<i32>} : memref<8x484xf32, #tpu.memory_space<vmem>>, vector<8x461xf32>,
    %c0_74 = arith.constant 0 : index
    %c0_75 = arith.constant 0 : index
    %76 = vector.load %arg7[%c0_74, %c0_75] : memref<8x484xf32, #tpu.memory_space<vmem>>, vector<8x484xf32>
    %c8_76 = arith.constant 8 : index
    %c0_77 = arith.constant 0 : index
    %77 = vector.load %arg5[%c8_76, %c0_77] : memref<40x1xf32, #tpu.memory_space<vmem>>, vector<8x1xf32>
    %78 = vector.broadcast %77 : vector<8x1xf32> to vector<8x484xf32>
    %79 = arith.addf %76, %78 : vector<8x484xf32>
    %cst_78 = arith.constant 0.000000e+00 : f32
    %80 = vector.broadcast %cst_78 : f32 to vector<8x484xf32>
    %81 = arith.maximumf %79, %80 : vector<8x484xf32>
    %c0_79 = arith.constant 0 : index
    %c8_80 = arith.constant 8 : index
    %c0_81 = arith.constant 0 : index
    %82 = vector.load %arg6[%c0_79, %c8_80, %c0_81] : memref<1x40x484xf32, #tpu.memory_space<vmem>>, vector<1x8x484xf32>
    %83 = vector.shape_cast %82 : vector<1x8x484xf32> to vector<8x484xf32>
    %84 = vector.shape_cast %81 : vector<8x484xf32> to vector<1x8x484xf32>
    tpu.vector_store %arg6[%c0_79, %c8_80, %c0_81], %84 {strides = array<i32>} : memref<1x40x484xf32, #tpu.memory_space<vmem>>, vector<1x8x484xf32>,
    %cst_82 = arith.constant 0.000000e+00 : f32
    %85 = vector.broadcast %cst_82 : f32 to vector<8x484xf32>
    %c0_83 = arith.constant 0 : index
    %c0_84 = arith.constant 0 : index
    %86 = vector.load %arg7[%c0_83, %c0_84] : memref<8x484xf32, #tpu.memory_space<vmem>>, vector<8x484xf32>
    tpu.vector_store %arg7[%c0_83, %c0_84], %85 {strides = array<i32>} : memref<8x484xf32, #tpu.memory_space<vmem>>, vector<8x484xf32>,
    %c9 = arith.constant 9 : index
    %c0_85 = arith.constant 0 : index
    %c0_86 = arith.constant 0 : index
    %87 = vector.load %arg4[%c9, %c0_85, %c0_86] : memref<27x8x8xf32, #tpu.memory_space<vmem>>, vector<1x8x8xf32>
    %88 = vector.shape_cast %87 : vector<1x8x8xf32> to vector<8x8xf32>
    %cst_87 = arith.constant dense<0.000000e+00> : vector<8x484xf32>
    %89 = tpu.matmul %88, %1, %cst_87 {dimension_numbers = #tpu.dot_dimension_numbers<[1], [0], [0], [1], [0, 0, 1, 1], [], []>} : vector<8x8xf32>, vector<8x484xf32>, vector<8x484xf32> -> vector<8x484xf32>
    %c0_88 = arith.constant 0 : index
    %c46 = arith.constant 46 : index
    %90 = vector.load %arg7[%c0_88, %c46] : memref<8x484xf32, #tpu.memory_space<vmem>>, vector<8x438xf32>
    %91 = vector.extract_strided_slice %89 {offsets = [0, 0], sizes = [8, 438], strides = [1, 1]} : vector<8x484xf32> to vector<8x438xf32>
    %92 = arith.addf %90, %91 : vector<8x438xf32>
    %c0_89 = arith.constant 0 : index
    %c46_90 = arith.constant 46 : index
    %93 = vector.load %arg7[%c0_89, %c46_90] : memref<8x484xf32, #tpu.memory_space<vmem>>, vector<8x438xf32>
    tpu.vector_store %arg7[%c0_89, %c46_90], %92 {strides = array<i32>} : memref<8x484xf32, #tpu.memory_space<vmem>>, vector<8x438xf32>,
    %c10 = arith.constant 10 : index
    %c0_91 = arith.constant 0 : index
    %c0_92 = arith.constant 0 : index
    %94 = vector.load %arg4[%c10, %c0_91, %c0_92] : memref<27x8x8xf32, #tpu.memory_space<vmem>>, vector<1x8x8xf32>
    %95 = vector.shape_cast %94 : vector<1x8x8xf32> to vector<8x8xf32>
    %cst_93 = arith.constant dense<0.000000e+00> : vector<8x484xf32>
    %96 = tpu.matmul %95, %1, %cst_93 {dimension_numbers = #tpu.dot_dimension_numbers<[1], [0], [0], [1], [0, 0, 1, 1], [], []>} : vector<8x8xf32>, vector<8x484xf32>, vector<8x484xf32> -> vector<8x484xf32>
    %c0_94 = arith.constant 0 : index
    %c44 = arith.constant 44 : index
    %97 = vector.load %arg7[%c0_94, %c44] : memref<8x484xf32, #tpu.memory_space<vmem>>, vector<8x440xf32>
    %98 = vector.extract_strided_slice %96 {offsets = [0, 0], sizes = [8, 440], strides = [1, 1]} : vector<8x484xf32> to vector<8x440xf32>
    %99 = arith.addf %97, %98 : vector<8x440xf32>
    %c0_95 = arith.constant 0 : index
    %c44_96 = arith.constant 44 : index
    %100 = vector.load %arg7[%c0_95, %c44_96] : memref<8x484xf32, #tpu.memory_space<vmem>>, vector<8x440xf32>
    tpu.vector_store %arg7[%c0_95, %c44_96], %99 {strides = array<i32>} : memref<8x484xf32, #tpu.memory_space<vmem>>, vector<8x440xf32>,
    %c11 = arith.constant 11 : index
    %c0_97 = arith.constant 0 : index
    %c0_98 = arith.constant 0 : index
    %101 = vector.load %arg4[%c11, %c0_97, %c0_98] : memref<27x8x8xf32, #tpu.memory_space<vmem>>, vector<1x8x8xf32>
    %102 = vector.shape_cast %101 : vector<1x8x8xf32> to vector<8x8xf32>
    %cst_99 = arith.constant dense<0.000000e+00> : vector<8x484xf32>
    %103 = tpu.matmul %102, %1, %cst_99 {dimension_numbers = #tpu.dot_dimension_numbers<[1], [0], [0], [1], [0, 0, 1, 1], [], []>} : vector<8x8xf32>, vector<8x484xf32>, vector<8x484xf32> -> vector<8x484xf32>
    %c0_100 = arith.constant 0 : index
    %c42 = arith.constant 42 : index
    %104 = vector.load %arg7[%c0_100, %c42] : memref<8x484xf32, #tpu.memory_space<vmem>>, vector<8x442xf32>
    %105 = vector.extract_strided_slice %103 {offsets = [0, 0], sizes = [8, 442], strides = [1, 1]} : vector<8x484xf32> to vector<8x442xf32>
    %106 = arith.addf %104, %105 : vector<8x442xf32>
    %c0_101 = arith.constant 0 : index
    %c42_102 = arith.constant 42 : index
    %107 = vector.load %arg7[%c0_101, %c42_102] : memref<8x484xf32, #tpu.memory_space<vmem>>, vector<8x442xf32>
    tpu.vector_store %arg7[%c0_101, %c42_102], %106 {strides = array<i32>} : memref<8x484xf32, #tpu.memory_space<vmem>>, vector<8x442xf32>,
    %c12 = arith.constant 12 : index
    %c0_103 = arith.constant 0 : index
    %c0_104 = arith.constant 0 : index
    %108 = vector.load %arg4[%c12, %c0_103, %c0_104] : memref<27x8x8xf32, #tpu.memory_space<vmem>>, vector<1x8x8xf32>
    %109 = vector.shape_cast %108 : vector<1x8x8xf32> to vector<8x8xf32>
    %cst_105 = arith.constant dense<0.000000e+00> : vector<8x484xf32>
    %110 = tpu.matmul %109, %1, %cst_105 {dimension_numbers = #tpu.dot_dimension_numbers<[1], [0], [0], [1], [0, 0, 1, 1], [], []>} : vector<8x8xf32>, vector<8x484xf32>, vector<8x484xf32> -> vector<8x484xf32>
    %c0_106 = arith.constant 0 : index
    %c2_107 = arith.constant 2 : index
    %111 = vector.load %arg7[%c0_106, %c2_107] : memref<8x484xf32, #tpu.memory_space<vmem>>, vector<8x482xf32>
    %112 = vector.extract_strided_slice %110 {offsets = [0, 0], sizes = [8, 482], strides = [1, 1]} : vector<8x484xf32> to vector<8x482xf32>
    %113 = arith.addf %111, %112 : vector<8x482xf32>
    %c0_108 = arith.constant 0 : index
    %c2_109 = arith.constant 2 : index
    %114 = vector.load %arg7[%c0_108, %c2_109] : memref<8x484xf32, #tpu.memory_space<vmem>>, vector<8x482xf32>
    tpu.vector_store %arg7[%c0_108, %c2_109], %113 {strides = array<i32>} : memref<8x484xf32, #tpu.memory_space<vmem>>, vector<8x482xf32>,
    %c13 = arith.constant 13 : index
    %c0_110 = arith.constant 0 : index
    %c0_111 = arith.constant 0 : index
    %115 = vector.load %arg4[%c13, %c0_110, %c0_111] : memref<27x8x8xf32, #tpu.memory_space<vmem>>, vector<1x8x8xf32>
    %116 = vector.shape_cast %115 : vector<1x8x8xf32> to vector<8x8xf32>
    %cst_112 = arith.constant dense<0.000000e+00> : vector<8x484xf32>
    %117 = tpu.matmul %116, %1, %cst_112 {dimension_numbers = #tpu.dot_dimension_numbers<[1], [0], [0], [1], [0, 0, 1, 1], [], []>} : vector<8x8xf32>, vector<8x484xf32>, vector<8x484xf32> -> vector<8x484xf32>
    %c0_113 = arith.constant 0 : index
    %c0_114 = arith.constant 0 : index
    %118 = vector.load %arg7[%c0_113, %c0_114] : memref<8x484xf32, #tpu.memory_space<vmem>>, vector<8x484xf32>
    %119 = arith.addf %118, %117 : vector<8x484xf32>
    %c0_115 = arith.constant 0 : index
    %c0_116 = arith.constant 0 : index
    %120 = vector.load %arg7[%c0_115, %c0_116] : memref<8x484xf32, #tpu.memory_space<vmem>>, vector<8x484xf32>
    tpu.vector_store %arg7[%c0_115, %c0_116], %119 {strides = array<i32>} : memref<8x484xf32, #tpu.memory_space<vmem>>, vector<8x484xf32>,
    %c14 = arith.constant 14 : index
    %c0_117 = arith.constant 0 : index
    %c0_118 = arith.constant 0 : index
    %121 = vector.load %arg4[%c14, %c0_117, %c0_118] : memref<27x8x8xf32, #tpu.memory_space<vmem>>, vector<1x8x8xf32>
    %122 = vector.shape_cast %121 : vector<1x8x8xf32> to vector<8x8xf32>
    %cst_119 = arith.constant dense<0.000000e+00> : vector<8x484xf32>
    %123 = tpu.matmul %122, %1, %cst_119 {dimension_numbers = #tpu.dot_dimension_numbers<[1], [0], [0], [1], [0, 0, 1, 1], [], []>} : vector<8x8xf32>, vector<8x484xf32>, vector<8x484xf32> -> vector<8x484xf32>
    %c0_120 = arith.constant 0 : index
    %c0_121 = arith.constant 0 : index
    %124 = vector.load %arg7[%c0_120, %c0_121] : memref<8x484xf32, #tpu.memory_space<vmem>>, vector<8x482xf32>
    %125 = vector.extract_strided_slice %123 {offsets = [0, 2], sizes = [8, 482], strides = [1, 1]} : vector<8x484xf32> to vector<8x482xf32>
    %126 = arith.addf %124, %125 : vector<8x482xf32>
    %c0_122 = arith.constant 0 : index
    %c0_123 = arith.constant 0 : index
    %127 = vector.load %arg7[%c0_122, %c0_123] : memref<8x484xf32, #tpu.memory_space<vmem>>, vector<8x482xf32>
    tpu.vector_store %arg7[%c0_122, %c0_123], %126 {strides = array<i32>} : memref<8x484xf32, #tpu.memory_space<vmem>>, vector<8x482xf32>,
    %c15 = arith.constant 15 : index
    %c0_124 = arith.constant 0 : index
    %c0_125 = arith.constant 0 : index
    %128 = vector.load %arg4[%c15, %c0_124, %c0_125] : memref<27x8x8xf32, #tpu.memory_space<vmem>>, vector<1x8x8xf32>
    %129 = vector.shape_cast %128 : vector<1x8x8xf32> to vector<8x8xf32>
    %cst_126 = arith.constant dense<0.000000e+00> : vector<8x484xf32>
    %130 = tpu.matmul %129, %1, %cst_126 {dimension_numbers = #tpu.dot_dimension_numbers<[1], [0], [0], [1], [0, 0, 1, 1], [], []>} : vector<8x8xf32>, vector<8x484xf32>, vector<8x484xf32> -> vector<8x484xf32>
    %c0_127 = arith.constant 0 : index
    %c0_128 = arith.constant 0 : index
    %131 = vector.load %arg7[%c0_127, %c0_128] : memref<8x484xf32, #tpu.memory_space<vmem>>, vector<8x442xf32>
    %132 = vector.extract_strided_slice %130 {offsets = [0, 42], sizes = [8, 442], strides = [1, 1]} : vector<8x484xf32> to vector<8x442xf32>
    %133 = arith.addf %131, %132 : vector<8x442xf32>
    %c0_129 = arith.constant 0 : index
    %c0_130 = arith.constant 0 : index
    %134 = vector.load %arg7[%c0_129, %c0_130] : memref<8x484xf32, #tpu.memory_space<vmem>>, vector<8x442xf32>
    tpu.vector_store %arg7[%c0_129, %c0_130], %133 {strides = array<i32>} : memref<8x484xf32, #tpu.memory_space<vmem>>, vector<8x442xf32>,
    %c16 = arith.constant 16 : index
    %c0_131 = arith.constant 0 : index
    %c0_132 = arith.constant 0 : index
    %135 = vector.load %arg4[%c16, %c0_131, %c0_132] : memref<27x8x8xf32, #tpu.memory_space<vmem>>, vector<1x8x8xf32>
    %136 = vector.shape_cast %135 : vector<1x8x8xf32> to vector<8x8xf32>
    %cst_133 = arith.constant dense<0.000000e+00> : vector<8x484xf32>
    %137 = tpu.matmul %136, %1, %cst_133 {dimension_numbers = #tpu.dot_dimension_numbers<[1], [0], [0], [1], [0, 0, 1, 1], [], []>} : vector<8x8xf32>, vector<8x484xf32>, vector<8x484xf32> -> vector<8x484xf32>
    %c0_134 = arith.constant 0 : index
    %c0_135 = arith.constant 0 : index
    %138 = vector.load %arg7[%c0_134, %c0_135] : memref<8x484xf32, #tpu.memory_space<vmem>>, vector<8x440xf32>
    %139 = vector.extract_strided_slice %137 {offsets = [0, 44], sizes = [8, 440], strides = [1, 1]} : vector<8x484xf32> to vector<8x440xf32>
    %140 = arith.addf %138, %139 : vector<8x440xf32>
    %c0_136 = arith.constant 0 : index
    %c0_137 = arith.constant 0 : index
    %141 = vector.load %arg7[%c0_136, %c0_137] : memref<8x484xf32, #tpu.memory_space<vmem>>, vector<8x440xf32>
    tpu.vector_store %arg7[%c0_136, %c0_137], %140 {strides = array<i32>} : memref<8x484xf32, #tpu.memory_space<vmem>>, vector<8x440xf32>,
    %c17 = arith.constant 17 : index
    %c0_138 = arith.constant 0 : index
    %c0_139 = arith.constant 0 : index
    %142 = vector.load %arg4[%c17, %c0_138, %c0_139] : memref<27x8x8xf32, #tpu.memory_space<vmem>>, vector<1x8x8xf32>
    %143 = vector.shape_cast %142 : vector<1x8x8xf32> to vector<8x8xf32>
    %cst_140 = arith.constant dense<0.000000e+00> : vector<8x484xf32>
    %144 = tpu.matmul %143, %1, %cst_140 {dimension_numbers = #tpu.dot_dimension_numbers<[1], [0], [0], [1], [0, 0, 1, 1], [], []>} : vector<8x8xf32>, vector<8x484xf32>, vector<8x484xf32> -> vector<8x484xf32>
    %c0_141 = arith.constant 0 : index
    %c0_142 = arith.constant 0 : index
    %145 = vector.load %arg7[%c0_141, %c0_142] : memref<8x484xf32, #tpu.memory_space<vmem>>, vector<8x438xf32>
    %146 = vector.extract_strided_slice %144 {offsets = [0, 46], sizes = [8, 438], strides = [1, 1]} : vector<8x484xf32> to vector<8x438xf32>
    %147 = arith.addf %145, %146 : vector<8x438xf32>
    %c0_143 = arith.constant 0 : index
    %c0_144 = arith.constant 0 : index
    %148 = vector.load %arg7[%c0_143, %c0_144] : memref<8x484xf32, #tpu.memory_space<vmem>>, vector<8x438xf32>
    tpu.vector_store %arg7[%c0_143, %c0_144], %147 {strides = array<i32>} : memref<8x484xf32, #tpu.memory_space<vmem>>, vector<8x438xf32>,
    %c0_145 = arith.constant 0 : index
    %c0_146 = arith.constant 0 : index
    %149 = vector.load %arg7[%c0_145, %c0_146] : memref<8x484xf32, #tpu.memory_space<vmem>>, vector<8x484xf32>
    %c16_147 = arith.constant 16 : index
    %c0_148 = arith.constant 0 : index
    %150 = vector.load %arg5[%c16_147, %c0_148] : memref<40x1xf32, #tpu.memory_space<vmem>>, vector<8x1xf32>
    %151 = vector.broadcast %150 : vector<8x1xf32> to vector<8x484xf32>
    %152 = arith.addf %149, %151 : vector<8x484xf32>
    %cst_149 = arith.constant 0.000000e+00 : f32
    %153 = vector.broadcast %cst_149 : f32 to vector<8x484xf32>
    %154 = arith.maximumf %152, %153 : vector<8x484xf32>
    %c0_150 = arith.constant 0 : index
    %c16_151 = arith.constant 16 : index
    %c0_152 = arith.constant 0 : index
    %155 = vector.load %arg6[%c0_150, %c16_151, %c0_152] : memref<1x40x484xf32, #tpu.memory_space<vmem>>, vector<1x8x484xf32>
    %156 = vector.shape_cast %155 : vector<1x8x484xf32> to vector<8x484xf32>
    %157 = vector.shape_cast %154 : vector<8x484xf32> to vector<1x8x484xf32>
    tpu.vector_store %arg6[%c0_150, %c16_151, %c0_152], %157 {strides = array<i32>} : memref<1x40x484xf32, #tpu.memory_space<vmem>>, vector<1x8x484xf32>,
    %cst_153 = arith.constant 0.000000e+00 : f32
    %158 = vector.broadcast %cst_153 : f32 to vector<8x484xf32>
    %c0_154 = arith.constant 0 : index
    %c0_155 = arith.constant 0 : index
    %159 = vector.load %arg7[%c0_154, %c0_155] : memref<8x484xf32, #tpu.memory_space<vmem>>, vector<8x484xf32>
    tpu.vector_store %arg7[%c0_154, %c0_155], %158 {strides = array<i32>} : memref<8x484xf32, #tpu.memory_space<vmem>>, vector<8x484xf32>,
    %c18 = arith.constant 18 : index
    %c0_156 = arith.constant 0 : index
    %c0_157 = arith.constant 0 : index
    %160 = vector.load %arg4[%c18, %c0_156, %c0_157] : memref<27x8x8xf32, #tpu.memory_space<vmem>>, vector<1x8x8xf32>
    %161 = vector.shape_cast %160 : vector<1x8x8xf32> to vector<8x8xf32>
    %cst_158 = arith.constant dense<0.000000e+00> : vector<8x484xf32>
    %162 = tpu.matmul %161, %1, %cst_158 {dimension_numbers = #tpu.dot_dimension_numbers<[1], [0], [0], [1], [0, 0, 1, 1], [], []>} : vector<8x8xf32>, vector<8x484xf32>, vector<8x484xf32> -> vector<8x484xf32>
    %c0_159 = arith.constant 0 : index
    %c69 = arith.constant 69 : index
    %163 = vector.load %arg7[%c0_159, %c69] : memref<8x484xf32, #tpu.memory_space<vmem>>, vector<8x415xf32>
    %164 = vector.extract_strided_slice %162 {offsets = [0, 0], sizes = [8, 415], strides = [1, 1]} : vector<8x484xf32> to vector<8x415xf32>
    %165 = arith.addf %163, %164 : vector<8x415xf32>
    %c0_160 = arith.constant 0 : index
    %c69_161 = arith.constant 69 : index
    %166 = vector.load %arg7[%c0_160, %c69_161] : memref<8x484xf32, #tpu.memory_space<vmem>>, vector<8x415xf32>
    tpu.vector_store %arg7[%c0_160, %c69_161], %165 {strides = array<i32>} : memref<8x484xf32, #tpu.memory_space<vmem>>, vector<8x415xf32>,
    %c19 = arith.constant 19 : index
    %c0_162 = arith.constant 0 : index
    %c0_163 = arith.constant 0 : index
    %167 = vector.load %arg4[%c19, %c0_162, %c0_163] : memref<27x8x8xf32, #tpu.memory_space<vmem>>, vector<1x8x8xf32>
    %168 = vector.shape_cast %167 : vector<1x8x8xf32> to vector<8x8xf32>
    %cst_164 = arith.constant dense<0.000000e+00> : vector<8x484xf32>
    %169 = tpu.matmul %168, %1, %cst_164 {dimension_numbers = #tpu.dot_dimension_numbers<[1], [0], [0], [1], [0, 0, 1, 1], [], []>} : vector<8x8xf32>, vector<8x484xf32>, vector<8x484xf32> -> vector<8x484xf32>
    %c0_165 = arith.constant 0 : index
    %c66 = arith.constant 66 : index
    %170 = vector.load %arg7[%c0_165, %c66] : memref<8x484xf32, #tpu.memory_space<vmem>>, vector<8x418xf32>
    %171 = vector.extract_strided_slice %169 {offsets = [0, 0], sizes = [8, 418], strides = [1, 1]} : vector<8x484xf32> to vector<8x418xf32>
    %172 = arith.addf %170, %171 : vector<8x418xf32>
    %c0_166 = arith.constant 0 : index
    %c66_167 = arith.constant 66 : index
    %173 = vector.load %arg7[%c0_166, %c66_167] : memref<8x484xf32, #tpu.memory_space<vmem>>, vector<8x418xf32>
    tpu.vector_store %arg7[%c0_166, %c66_167], %172 {strides = array<i32>} : memref<8x484xf32, #tpu.memory_space<vmem>>, vector<8x418xf32>,
    %c20 = arith.constant 20 : index
    %c0_168 = arith.constant 0 : index
    %c0_169 = arith.constant 0 : index
    %174 = vector.load %arg4[%c20, %c0_168, %c0_169] : memref<27x8x8xf32, #tpu.memory_space<vmem>>, vector<1x8x8xf32>
    %175 = vector.shape_cast %174 : vector<1x8x8xf32> to vector<8x8xf32>
    %cst_170 = arith.constant dense<0.000000e+00> : vector<8x484xf32>
    %176 = tpu.matmul %175, %1, %cst_170 {dimension_numbers = #tpu.dot_dimension_numbers<[1], [0], [0], [1], [0, 0, 1, 1], [], []>} : vector<8x8xf32>, vector<8x484xf32>, vector<8x484xf32> -> vector<8x484xf32>
    %c0_171 = arith.constant 0 : index
    %c63 = arith.constant 63 : index
    %177 = vector.load %arg7[%c0_171, %c63] : memref<8x484xf32, #tpu.memory_space<vmem>>, vector<8x421xf32>
    %178 = vector.extract_strided_slice %176 {offsets = [0, 0], sizes = [8, 421], strides = [1, 1]} : vector<8x484xf32> to vector<8x421xf32>
    %179 = arith.addf %177, %178 : vector<8x421xf32>
    %c0_172 = arith.constant 0 : index
    %c63_173 = arith.constant 63 : index
    %180 = vector.load %arg7[%c0_172, %c63_173] : memref<8x484xf32, #tpu.memory_space<vmem>>, vector<8x421xf32>
    tpu.vector_store %arg7[%c0_172, %c63_173], %179 {strides = array<i32>} : memref<8x484xf32, #tpu.memory_space<vmem>>, vector<8x421xf32>,
    %c21_174 = arith.constant 21 : index
    %c0_175 = arith.constant 0 : index
    %c0_176 = arith.constant 0 : index
    %181 = vector.load %arg4[%c21_174, %c0_175, %c0_176] : memref<27x8x8xf32, #tpu.memory_space<vmem>>, vector<1x8x8xf32>
    %182 = vector.shape_cast %181 : vector<1x8x8xf32> to vector<8x8xf32>
    %cst_177 = arith.constant dense<0.000000e+00> : vector<8x484xf32>
    %183 = tpu.matmul %182, %1, %cst_177 {dimension_numbers = #tpu.dot_dimension_numbers<[1], [0], [0], [1], [0, 0, 1, 1], [], []>} : vector<8x8xf32>, vector<8x484xf32>, vector<8x484xf32> -> vector<8x484xf32>
    %c0_178 = arith.constant 0 : index
    %c3_179 = arith.constant 3 : index
    %184 = vector.load %arg7[%c0_178, %c3_179] : memref<8x484xf32, #tpu.memory_space<vmem>>, vector<8x481xf32>
    %185 = vector.extract_strided_slice %183 {offsets = [0, 0], sizes = [8, 481], strides = [1, 1]} : vector<8x484xf32> to vector<8x481xf32>
    %186 = arith.addf %184, %185 : vector<8x481xf32>
    %c0_180 = arith.constant 0 : index
    %c3_181 = arith.constant 3 : index
    %187 = vector.load %arg7[%c0_180, %c3_181] : memref<8x484xf32, #tpu.memory_space<vmem>>, vector<8x481xf32>
    tpu.vector_store %arg7[%c0_180, %c3_181], %186 {strides = array<i32>} : memref<8x484xf32, #tpu.memory_space<vmem>>, vector<8x481xf32>,
    %c22_182 = arith.constant 22 : index
    %c0_183 = arith.constant 0 : index
    %c0_184 = arith.constant 0 : index
    %188 = vector.load %arg4[%c22_182, %c0_183, %c0_184] : memref<27x8x8xf32, #tpu.memory_space<vmem>>, vector<1x8x8xf32>
    %189 = vector.shape_cast %188 : vector<1x8x8xf32> to vector<8x8xf32>
    %cst_185 = arith.constant dense<0.000000e+00> : vector<8x484xf32>
    %190 = tpu.matmul %189, %1, %cst_185 {dimension_numbers = #tpu.dot_dimension_numbers<[1], [0], [0], [1], [0, 0, 1, 1], [], []>} : vector<8x8xf32>, vector<8x484xf32>, vector<8x484xf32> -> vector<8x484xf32>
    %c0_186 = arith.constant 0 : index
    %c0_187 = arith.constant 0 : index
    %191 = vector.load %arg7[%c0_186, %c0_187] : memref<8x484xf32, #tpu.memory_space<vmem>>, vector<8x484xf32>
    %192 = arith.addf %191, %190 : vector<8x484xf32>
    %c0_188 = arith.constant 0 : index
    %c0_189 = arith.constant 0 : index
    %193 = vector.load %arg7[%c0_188, %c0_189] : memref<8x484xf32, #tpu.memory_space<vmem>>, vector<8x484xf32>
    tpu.vector_store %arg7[%c0_188, %c0_189], %192 {strides = array<i32>} : memref<8x484xf32, #tpu.memory_space<vmem>>, vector<8x484xf32>,
    %c23_190 = arith.constant 23 : index
    %c0_191 = arith.constant 0 : index
    %c0_192 = arith.constant 0 : index
    %194 = vector.load %arg4[%c23_190, %c0_191, %c0_192] : memref<27x8x8xf32, #tpu.memory_space<vmem>>, vector<1x8x8xf32>
    %195 = vector.shape_cast %194 : vector<1x8x8xf32> to vector<8x8xf32>
    %cst_193 = arith.constant dense<0.000000e+00> : vector<8x484xf32>
    %196 = tpu.matmul %195, %1, %cst_193 {dimension_numbers = #tpu.dot_dimension_numbers<[1], [0], [0], [1], [0, 0, 1, 1], [], []>} : vector<8x8xf32>, vector<8x484xf32>, vector<8x484xf32> -> vector<8x484xf32>
    %c0_194 = arith.constant 0 : index
    %c0_195 = arith.constant 0 : index
    %197 = vector.load %arg7[%c0_194, %c0_195] : memref<8x484xf32, #tpu.memory_space<vmem>>, vector<8x481xf32>
    %198 = vector.extract_strided_slice %196 {offsets = [0, 3], sizes = [8, 481], strides = [1, 1]} : vector<8x484xf32> to vector<8x481xf32>
    %199 = arith.addf %197, %198 : vector<8x481xf32>
    %c0_196 = arith.constant 0 : index
    %c0_197 = arith.constant 0 : index
    %200 = vector.load %arg7[%c0_196, %c0_197] : memref<8x484xf32, #tpu.memory_space<vmem>>, vector<8x481xf32>
    tpu.vector_store %arg7[%c0_196, %c0_197], %199 {strides = array<i32>} : memref<8x484xf32, #tpu.memory_space<vmem>>, vector<8x481xf32>,
    %c24 = arith.constant 24 : index
    %c0_198 = arith.constant 0 : index
    %c0_199 = arith.constant 0 : index
    %201 = vector.load %arg4[%c24, %c0_198, %c0_199] : memref<27x8x8xf32, #tpu.memory_space<vmem>>, vector<1x8x8xf32>
    %202 = vector.shape_cast %201 : vector<1x8x8xf32> to vector<8x8xf32>
    %cst_200 = arith.constant dense<0.000000e+00> : vector<8x484xf32>
    %203 = tpu.matmul %202, %1, %cst_200 {dimension_numbers = #tpu.dot_dimension_numbers<[1], [0], [0], [1], [0, 0, 1, 1], [], []>} : vector<8x8xf32>, vector<8x484xf32>, vector<8x484xf32> -> vector<8x484xf32>
    %c0_201 = arith.constant 0 : index
    %c0_202 = arith.constant 0 : index
    %204 = vector.load %arg7[%c0_201, %c0_202] : memref<8x484xf32, #tpu.memory_space<vmem>>, vector<8x421xf32>
    %205 = vector.extract_strided_slice %203 {offsets = [0, 63], sizes = [8, 421], strides = [1, 1]} : vector<8x484xf32> to vector<8x421xf32>
    %206 = arith.addf %204, %205 : vector<8x421xf32>
    %c0_203 = arith.constant 0 : index
    %c0_204 = arith.constant 0 : index
    %207 = vector.load %arg7[%c0_203, %c0_204] : memref<8x484xf32, #tpu.memory_space<vmem>>, vector<8x421xf32>
    tpu.vector_store %arg7[%c0_203, %c0_204], %206 {strides = array<i32>} : memref<8x484xf32, #tpu.memory_space<vmem>>, vector<8x421xf32>,
    %c25 = arith.constant 25 : index
    %c0_205 = arith.constant 0 : index
    %c0_206 = arith.constant 0 : index
    %208 = vector.load %arg4[%c25, %c0_205, %c0_206] : memref<27x8x8xf32, #tpu.memory_space<vmem>>, vector<1x8x8xf32>
    %209 = vector.shape_cast %208 : vector<1x8x8xf32> to vector<8x8xf32>
    %cst_207 = arith.constant dense<0.000000e+00> : vector<8x484xf32>
    %210 = tpu.matmul %209, %1, %cst_207 {dimension_numbers = #tpu.dot_dimension_numbers<[1], [0], [0], [1], [0, 0, 1, 1], [], []>} : vector<8x8xf32>, vector<8x484xf32>, vector<8x484xf32> -> vector<8x484xf32>
    %c0_208 = arith.constant 0 : index
    %c0_209 = arith.constant 0 : index
    %211 = vector.load %arg7[%c0_208, %c0_209] : memref<8x484xf32, #tpu.memory_space<vmem>>, vector<8x418xf32>
    %212 = vector.extract_strided_slice %210 {offsets = [0, 66], sizes = [8, 418], strides = [1, 1]} : vector<8x484xf32> to vector<8x418xf32>
    %213 = arith.addf %211, %212 : vector<8x418xf32>
    %c0_210 = arith.constant 0 : index
    %c0_211 = arith.constant 0 : index
    %214 = vector.load %arg7[%c0_210, %c0_211] : memref<8x484xf32, #tpu.memory_space<vmem>>, vector<8x418xf32>
    tpu.vector_store %arg7[%c0_210, %c0_211], %213 {strides = array<i32>} : memref<8x484xf32, #tpu.memory_space<vmem>>, vector<8x418xf32>,
    %c26 = arith.constant 26 : index
    %c0_212 = arith.constant 0 : index
    %c0_213 = arith.constant 0 : index
    %215 = vector.load %arg4[%c26, %c0_212, %c0_213] : memref<27x8x8xf32, #tpu.memory_space<vmem>>, vector<1x8x8xf32>
    %216 = vector.shape_cast %215 : vector<1x8x8xf32> to vector<8x8xf32>
    %cst_214 = arith.constant dense<0.000000e+00> : vector<8x484xf32>
    %217 = tpu.matmul %216, %1, %cst_214 {dimension_numbers = #tpu.dot_dimension_numbers<[1], [0], [0], [1], [0, 0, 1, 1], [], []>} : vector<8x8xf32>, vector<8x484xf32>, vector<8x484xf32> -> vector<8x484xf32>
    %c0_215 = arith.constant 0 : index
    %c0_216 = arith.constant 0 : index
    %218 = vector.load %arg7[%c0_215, %c0_216] : memref<8x484xf32, #tpu.memory_space<vmem>>, vector<8x415xf32>
    %219 = vector.extract_strided_slice %217 {offsets = [0, 69], sizes = [8, 415], strides = [1, 1]} : vector<8x484xf32> to vector<8x415xf32>
    %220 = arith.addf %218, %219 : vector<8x415xf32>
    %c0_217 = arith.constant 0 : index
    %c0_218 = arith.constant 0 : index
    %221 = vector.load %arg7[%c0_217, %c0_218] : memref<8x484xf32, #tpu.memory_space<vmem>>, vector<8x415xf32>
    tpu.vector_store %arg7[%c0_217, %c0_218], %220 {strides = array<i32>} : memref<8x484xf32, #tpu.memory_space<vmem>>, vector<8x415xf32>,
    %c0_219 = arith.constant 0 : index
    %c0_220 = arith.constant 0 : index
    %222 = vector.load %arg7[%c0_219, %c0_220] : memref<8x484xf32, #tpu.memory_space<vmem>>, vector<8x484xf32>
    %c24_221 = arith.constant 24 : index
    %c0_222 = arith.constant 0 : index
    %223 = vector.load %arg5[%c24_221, %c0_222] : memref<40x1xf32, #tpu.memory_space<vmem>>, vector<8x1xf32>
    %224 = vector.broadcast %223 : vector<8x1xf32> to vector<8x484xf32>
    %225 = arith.addf %222, %224 : vector<8x484xf32>
    %cst_223 = arith.constant 0.000000e+00 : f32
    %226 = vector.broadcast %cst_223 : f32 to vector<8x484xf32>
    %227 = arith.maximumf %225, %226 : vector<8x484xf32>
    %c0_224 = arith.constant 0 : index
    %c24_225 = arith.constant 24 : index
    %c0_226 = arith.constant 0 : index
    %228 = vector.load %arg6[%c0_224, %c24_225, %c0_226] : memref<1x40x484xf32, #tpu.memory_space<vmem>>, vector<1x8x484xf32>
    %229 = vector.shape_cast %228 : vector<1x8x484xf32> to vector<8x484xf32>
    %230 = vector.shape_cast %227 : vector<8x484xf32> to vector<1x8x484xf32>
    tpu.vector_store %arg6[%c0_224, %c24_225, %c0_226], %230 {strides = array<i32>} : memref<1x40x484xf32, #tpu.memory_space<vmem>>, vector<1x8x484xf32>,
    %c0_227 = arith.constant 0 : index
    %c0_228 = arith.constant 0 : index
    %231 = vector.load %arg3[%c0_227, %c0_228] : memref<8x8xf32, #tpu.memory_space<vmem>>, vector<8x8xf32>
    %cst_229 = arith.constant dense<0.000000e+00> : vector<8x484xf32>
    %232 = tpu.matmul %231, %1, %cst_229 {dimension_numbers = #tpu.dot_dimension_numbers<[1], [0], [0], [1], [0, 0, 1, 1], [], []>} : vector<8x8xf32>, vector<8x484xf32>, vector<8x484xf32> -> vector<8x484xf32>
    %c32 = arith.constant 32 : index
    %c0_230 = arith.constant 0 : index
    %233 = vector.load %arg5[%c32, %c0_230] : memref<40x1xf32, #tpu.memory_space<vmem>>, vector<8x1xf32>
    %234 = vector.broadcast %233 : vector<8x1xf32> to vector<8x484xf32>
    %235 = arith.addf %232, %234 : vector<8x484xf32>
    %cst_231 = arith.constant 0.000000e+00 : f32
    %236 = vector.broadcast %cst_231 : f32 to vector<8x484xf32>
    %237 = arith.maximumf %235, %236 : vector<8x484xf32>
    %c0_232 = arith.constant 0 : index
    %c32_233 = arith.constant 32 : index
    %c0_234 = arith.constant 0 : index
    %238 = vector.load %arg6[%c0_232, %c32_233, %c0_234] : memref<1x40x484xf32, #tpu.memory_space<vmem>>, vector<1x8x484xf32>
    %239 = vector.shape_cast %238 : vector<1x8x484xf32> to vector<8x484xf32>
    %240 = vector.shape_cast %237 : vector<8x484xf32> to vector<1x8x484xf32>
    tpu.vector_store %arg6[%c0_232, %c32_233, %c0_234], %240 {strides = array<i32>} : memref<1x40x484xf32, #tpu.memory_space<vmem>>, vector<1x8x484xf32>,
    return
  }
  func.func @transform_0(%arg0: i32) -> (i32, i32, i32) {
    %c0_i32 = arith.constant 0 : i32
    %c0_i32_0 = arith.constant 0 : i32
    %c0_i32_1 = arith.constant 0 : i32
    return %arg0, %c0_i32, %c0_i32_0 : i32, i32, i32
  }
  func.func @transform_1(%arg0: i32) -> (i32, i32) {
    %c0_i32 = arith.constant 0 : i32
    %c0_i32_0 = arith.constant 0 : i32
    %c0_i32_1 = arith.constant 0 : i32
    return %c0_i32, %c0_i32_0 : i32, i32
  }
  func.func @transform_2(%arg0: i32) -> (i32, i32) {
    %c0_i32 = arith.constant 0 : i32
    %c0_i32_0 = arith.constant 0 : i32
    %c0_i32_1 = arith.constant 0 : i32
    return %c0_i32, %c0_i32_0 : i32, i32
  }
  func.func @transform_3(%arg0: i32) -> (i32, i32, i32) {
    %c0_i32 = arith.constant 0 : i32
    %c0_i32_0 = arith.constant 0 : i32
    %c0_i32_1 = arith.constant 0 : i32
    %c0_i32_2 = arith.constant 0 : i32
    return %c0_i32, %c0_i32_0, %c0_i32_1 : i32, i32, i32
  }
  func.func @transform_4(%arg0: i32) -> (i32, i32) {
    %c0_i32 = arith.constant 0 : i32
    %c0_i32_0 = arith.constant 0 : i32
    %c0_i32_1 = arith.constant 0 : i32
    return %c0_i32, %c0_i32_0 : i32, i32
  }
  func.func @transform_5(%arg0: i32) -> (i32, i32, i32) {
    %c0_i32 = arith.constant 0 : i32
    %c0_i32_0 = arith.constant 0 : i32
    %c0_i32_1 = arith.constant 0 : i32
    return %arg0, %c0_i32, %c0_i32_0 : i32, i32, i32
  }
}

</mosaic_0001>

<bundles_post_ra>
// kernel: aspp_forward.1
= control target key start
LH: loop header
LB: loop body
LE: loop exit
PB: predicated region body
PF: predicated region fallthrough
CT: control target
= control target key end

     0   :  { %s5676_s18 = smov 0   ;;  %s6486_s0 = inlined_call_operand.vmem [shape: f32[2,8,484], index: 0, kind: input, shape index: {}]   ;;  %s6487_s1 = inlined_call_operand.vmem [shape: f32[8,8], index: 1, kind: input, shape index: {}]   ;;  %s6488_s2 = inlined_call_operand.vmem [shape: f32[8,8], index: 2, kind: input, shape index: {}]   ;;  %s6489_s3 = inlined_call_operand.vmem [shape: f32[27,8,8], index: 3, kind: input, shape index: {}]   ;;  %s6490_s4 = inlined_call_operand.vmem [shape: f32[40,1], index: 4, kind: input, shape index: {}]   ;;  %s6491_s5 = inlined_call_operand.vmem [shape: f32[2,40,484], index: 5, kind: output, shape index: {}]  }
   0x1 LB: > { %s5480_s19 = sadd.s32 4294967295, %s5618_s18   ;;  %p5484_p0 = scmp.ge.s32.totalorder %s5618_s18, 1  ;;  %s5618_s18 = sphi %s5676_s18, %s15_s18  }
   0x2   : > { %p187_p1 = scmp.lt.s32.totalorder %s5618_s18, 3 }
   0x4   : > { %p188_p2 = pnand %p5484_p0, %p187_p1 }
   0x6   : > { %191 = sbr.rel (%p188_p2) target bundleno = 648 (0x288), region = 40 }
   0xd   : > { %p215_p3 = scmp.lt.s32.totalorder %s5480_s19, 1  ;;  %v6492_v0 = vmov 0.0   ;;  %v229_v1 = vld [vmem:[%s6487_s1] sm:$0xff]  ;;  %vm236_vm0 = vcmask 64512   ;;  %v5492_v7 = vld [vmem:[%s6489_s3 + $0x8] sm:$0xff]  ;;  %v5495_v8 = vld [vmem:[%s6489_s3 + $0x10] sm:$0xff] }
   0xe   : > { %304 = vmatprep.mubr.f32.mxu0 %v6492_v0  ;;  %391 = vst [vmem:[#allocation2] sm:$0xff] %v6492_v0  ;;  %375 = vmatprep.mubr.f32.mxu1 %v6492_v0  ;;  %v395_v6 = vld [vmem:[%s6489_s3] sm:$0xff]  ;;  %v5498_v9 = vld [vmem:[%s6489_s3 + $0x18] sm:$0xff]  ;;  %v5504_v11 = vld [vmem:[%s6489_s3 + $0x28] sm:$0xff]  ;;  %vm389_vm1 = vcmask 818176   ;;  %s5621_s9 = smov 23  }
   0xf   : > { %s6500_s19 = smov (!%p215_p3, %s5480_s19), 1  ;;  %v5501_v10 = vld [vmem:[%s6489_s3 + $0x20] sm:$0xff]  ;;  %v5507_v12 = vld [vmem:[%s6489_s3 + $0x30] sm:$0xff]  ;;  %v5510_v13 = vld [vmem:[%s6489_s3 + $0x38] sm:$0xff]  ;;  %394 = vst.msk [vmem:[#allocation2 + $0x18] sm:$0xff] %vm389_vm1, %v6492_v0  ;;  %s5622_s10 = smov 22  }
  0x10   : > { %s5574_s20 = sshll.u32 %s6500_s19, 5  ;;  %v5513_v14 = vld [vmem:[%s6489_s3 + $0x40] sm:$0xff]  ;;  %v5516_v15 = vld [vmem:[%s6489_s3 + $0x48] sm:$0xff]  ;;  %v5519_v16 = vld [vmem:[%s6489_s3 + $0x50] sm:$0xff]  ;;  %s5623_s11 = smov 21   ;;  %vm569_vm2 = vcmask 1047736  }
  0x11   : > { %s219_s23 = scalar_lea.vmem %s6486_s0, %s5574_s20  ;;  %v5522_v17 = vld [vmem:[%s6489_s3 + $0x58] sm:$0xff]  ;;  %v5525_v18 = vld [vmem:[%s6489_s3 + $0x60] sm:$0xff]  ;;  %v5528_v19 = vld [vmem:[%s6489_s3 + $0x68] sm:$0xff]  ;;  %s5624_s12 = smov 1   ;;  %vm557_vm3 = vcmask 187392   ;;  %vm737_vm4 = vcmask 179200  }
  0x12   : > { %v5696_v2 = vld [vmem:[%s219_s23 + $0x8] sm:$0xff]  ;;  %v5698_v3 = vld [vmem:[%s219_s23 + $0x18] sm:$0xff]  ;;  %v5700_v4 = vld [vmem:[%s219_s23] sm:$0xff]  ;;  %s5625_s13 = smov 127   ;;  %s5626_s16 = smov 107   ;;  %vm749_vm5 = vcmask 1047728  }
  0x13   : > { %240 = vmatprep.subr.mxu0 %v5696_v2  ;;  %311 = vmatprep.subr.mxu1 %v5698_v3  ;;  %v5704_v5 = vld [vmem:[%s219_s23 + $0x10] sm:$0xff]  ;;  %v5534_v21 = vld [vmem:[%s6489_s3 + $0x78] sm:$0xff]  ;;  %v5537_v22 = vld [vmem:[%s6489_s3 + $0x80] sm:$0xff]  ;;  %s5628_s17 = smov 106   ;;  %s5629_s20 = smov 105   ;;  %vm917_vm6 = vcmask 171008  }
  0x14   : > { %241 = vmatpush1.msra.mxu0 %v5700_v4  ;;  %312 = vmatpush1.msra.mxu1 %v5704_v5  ;;  %v5531_v20 = vld [vmem:[%s6489_s3 + $0x70] sm:$0xff]  ;;  %v5540_v23 = vld [vmem:[%s6489_s3 + $0x88] sm:$0xff]  ;;  %v5546_v25 = vld [vmem:[%s6489_s3 + $0x98] sm:$0xff]  ;;  %s5630_s21 = smov 46   ;;  %s5631_s22 = smov 44   ;;  %vm929_vm7 = vcmask 1047720  }
  0x15   : > { %5488 = vmatmul.mubr.msk.f32.vlgmr.msra.gmra.mrb[0].mxu0 %vm236_vm0, %v229_v1  ;;  %5489 = vmatmul.mubr.msk.f32.vlgmr.msra.gmra.mrb[0].mxu1 %vm236_vm0, %v229_v1  ;;  %v5543_v24 = vld [vmem:[%s6489_s3 + $0x90] sm:$0xff]  ;;  %v5549_v26 = vld [vmem:[%s6489_s3 + $0xa0] sm:$0xff]  ;;  %v5552_v27 = vld [vmem:[%s6489_s3 + $0xa8] sm:$0xff]  ;;  %s5632_s23 = smov 42   ;;  %s5633_s24 = smov 2   ;;  %vm1097_vm8 = vcmask 7168  }
  0x16   : > { %399 = vmatprep.subr.mxu0 %v5696_v2  ;;  %470 = vmatprep.subr.mxu1 %v5698_v3  ;;  %v5555_v28 = vld [vmem:[%s6489_s3 + $0xb0] sm:$0xff]  ;;  %v5558_v29 = vld [vmem:[%s6489_s3 + $0xb8] sm:$0xff]  ;;  %v5561_v30 = vld [vmem:[%s6489_s3 + $0xc0] sm:$0xff]  ;;  %s5634_s25 = smov 126   ;;  %s5635_s26 = smov 86   ;;  %vm1109_vm9 = vcmask 1047560  }
  0x17   : > { %400 = vmatpush1.msra.mxu0 %v5700_v4  ;;  %471 = vmatpush1.msra.mxu1 %v5704_v5  ;;  %v5564_v31 = vld [vmem:[%s6489_s3 + $0xc8] sm:$0xff]  ;;  %v5567_v32 = vld [vmem:[%s6489_s3 + $0xd0] sm:$0xff]  ;;  %s5636_s27 = smov 84   ;;  %s5637_s28 = smov 82   ;;  %vm1436_vm10 = vcmask 1039360   ;;  %vm1616_vm11 = vcmask 875520  }
  0x18   : > { %463 = vmatprep.mubr.f32.mxu0 %v6492_v0  ;;  %534 = vmatprep.mubr.f32.mxu1 %v6492_v0  ;;  %s5638_s29 = smov 69   ;;  %s5639_s30 = smov 66   ;;  %vm1796_vm12 = vcmask 867328   ;;  %vm1976_vm13 = vcmask 859136   ;;  %vm1451_vm14 = vcmask 809984   ;;  %vm2182_vm15 = vcmask 375808  }
  0x19   : > { %5490 = vmatmul.mubr.msk.f32.vlgmr.msra.gmra.mrb[2].mxu0 %vm236_vm0, %v395_v6  ;;  %5491 = vmatmul.mubr.msk.f32.vlgmr.msra.gmra.mrb[2].mxu1 %vm236_vm0, %v395_v6  ;;  %s5640_s6 = smov 63   ;;  %s5641_s7 = smov 3  }
  0x1a   : > { %579 = vmatprep.subr.mxu0 %v5696_v2  ;;  %643 = vmatprep.mubr.f32.mxu0 %v6492_v0  ;;  %s5642_s8 = smov 125  }
  0x1b   : > { %580 = vmatpush1.msra.mxu0 %v5700_v4  ;;  %650 = vmatprep.subr.mxu1 %v5698_v3 }
  0x1c   : > { %651 = vmatpush1.msra.mxu1 %v5704_v5  ;;  %714 = vmatprep.mubr.f32.mxu1 %v6492_v0 }
  0x1d   : > { %5493 = vmatmul.mubr.msk.f32.vlgmr.msra.gmra.mrb[4].mxu0 %vm236_vm0, %v5492_v7  ;;  %5494 = vmatmul.mubr.msk.f32.vlgmr.msra.gmra.mrb[4].mxu1 %vm236_vm0, %v5492_v7 }
  0x1e   : > { %759 = vmatprep.subr.mxu0 %v5696_v2  ;;  %823 = vmatprep.mubr.f32.mxu0 %v6492_v0 }
  0x1f   : > { %760 = vmatpush1.msra.mxu0 %v5700_v4  ;;  %830 = vmatprep.subr.mxu1 %v5698_v3 }
  0x20   : > { %831 = vmatpush1.msra.mxu1 %v5704_v5  ;;  %894 = vmatprep.mubr.f32.mxu1 %v6492_v0 }
  0x21   : > { %5496 = vmatmul.mubr.msk.f32.vlgmr.msra.gmra.mrb[6].mxu0 %vm236_vm0, %v5495_v8  ;;  %5497 = vmatmul.mubr.msk.f32.vlgmr.msra.gmra.mrb[6].mxu1 %vm236_vm0, %v5495_v8  ;;  %v5265_v8 = vld [vmem:[%s6488_s2] sm:$0xff] }
  0x22   : > { %939 = vmatprep.subr.mxu0 %v5696_v2  ;;  %1003 = vmatprep.mubr.f32.mxu0 %v6492_v0 }
  0x23   : > { %940 = vmatpush1.msra.mxu0 %v5700_v4  ;;  %1010 = vmatprep.subr.mxu1 %v5698_v3 }
  0x24   : > { %1119 = vmatprep.subr.mxu0 %v5696_v2  ;;  %1011 = vmatpush1.msra.mxu1 %v5704_v5 }
  0x25   : > { %5499 = vmatmul.mubr.msk.f32.vlgmr.msra.gmra.mrb[8].mxu0 %vm236_vm0, %v5498_v9  ;;  %1074 = vmatprep.mubr.f32.mxu1 %v6492_v0 }
  0x26   : > { %1120 = vmatpush1.msra.mxu0 %v5700_v4  ;;  %1183 = vmatprep.mubr.f32.mxu0 %v6492_v0 }
  0x27   : > { %5500 = vmatmul.mubr.msk.f32.vlgmr.msra.gmra.mrb[8].mxu1 %vm236_vm0, %v5498_v9  ;;  %1190 = vmatprep.subr.mxu1 %v5698_v3 }
  0x28   : > { %1278 = vmatprep.subr.mxu0 %v5696_v2  ;;  %1191 = vmatpush1.msra.mxu1 %v5704_v5 }
  0x29   : > { %5502 = vmatmul.mubr.msk.f32.vlgmr.msra.gmra.mrb[10].mxu0 %vm236_vm0, %v5501_v10  ;;  %1254 = vmatprep.mubr.f32.mxu1 %v6492_v0 }
  0x2a   : > { %1279 = vmatpush1.msra.mxu0 %v5700_v4  ;;  %1342 = vmatprep.mubr.f32.mxu0 %v6492_v0 }
  0x2b   : > { %5503 = vmatmul.mubr.msk.f32.vlgmr.msra.gmra.mrb[10].mxu1 %vm236_vm0, %v5501_v10  ;;  %1349 = vmatprep.subr.mxu1 %v5698_v3 }
  0x2c   : > { %1350 = vmatpush1.msra.mxu1 %v5704_v5  ;;  %1413 = vmatprep.mubr.f32.mxu1 %v6492_v0 }
  0x2d   : > { %5505 = vmatmul.mubr.msk.f32.vlgmr.msra.gmra.mrb[12].mxu0 %vm236_vm0, %v5504_v11  ;;  %1458 = vmatprep.subr.mxu0 %v5696_v2 }
  0x2e   : > { %1459 = vmatpush1.msra.mxu0 %v5700_v4  ;;  %1522 = vmatprep.mubr.f32.mxu0 %v6492_v0 }
  0x2f   : > { %5506 = vmatmul.mubr.msk.f32.vlgmr.msra.gmra.mrb[12].mxu1 %vm236_vm0, %v5504_v11  ;;  %1529 = vmatprep.subr.mxu1 %v5698_v3 }
  0x30   : > { %1530 = vmatpush1.msra.mxu1 %v5704_v5  ;;  %1593 = vmatprep.mubr.f32.mxu1 %v6492_v0 }
  0x31   : > { %5508 = vmatmul.mubr.msk.f32.vlgmr.msra.gmra.mrb[14].mxu0 %vm236_vm0, %v5507_v12  ;;  %1638 = vmatprep.subr.mxu0 %v5696_v2 }
  0x32   : > { %1639 = vmatpush1.msra.mxu0 %v5700_v4  ;;  %1702 = vmatprep.mubr.f32.mxu0 %v6492_v0 }
  0x33   : > { %5509 = vmatmul.mubr.msk.f32.vlgmr.msra.gmra.mrb[14].mxu1 %vm236_vm0, %v5507_v12  ;;  %1709 = vmatprep.subr.mxu1 %v5698_v3 }
  0x34   : > { %1710 = vmatpush1.msra.mxu1 %v5704_v5  ;;  %1773 = vmatprep.mubr.f32.mxu1 %v6492_v0 }
  0x35   : > { %5511 = vmatmul.mubr.msk.f32.vlgmr.msra.gmra.mrb[16].mxu0 %vm236_vm0, %v5510_v13  ;;  %1818 = vmatprep.subr.mxu0 %v5696_v2 }
  0x36   : > { %1819 = vmatpush1.msra.mxu0 %v5700_v4  ;;  %1882 = vmatprep.mubr.f32.mxu0 %v6492_v0 }
  0x37   : > { %5512 = vmatmul.mubr.msk.f32.vlgmr.msra.gmra.mrb[16].mxu1 %vm236_vm0, %v5510_v13  ;;  %1889 = vmatprep.subr.mxu1 %v5698_v3 }
  0x38   : > { %1890 = vmatpush1.msra.mxu1 %v5704_v5  ;;  %1953 = vmatprep.mubr.f32.mxu1 %v6492_v0 }
  0x39   : > { %5514 = vmatmul.mubr.msk.f32.vlgmr.msra.gmra.mrb[18].mxu0 %vm236_vm0, %v5513_v14  ;;  %2024 = vmatprep.subr.mxu0 %v5696_v2 }
  0x3a   : > { %2025 = vmatpush1.msra.mxu0 %v5700_v4  ;;  %2088 = vmatprep.mubr.f32.mxu0 %v6492_v0 }
  0x3b   : > { %5515 = vmatmul.mubr.msk.f32.vlgmr.msra.gmra.mrb[18].mxu1 %vm236_vm0, %v5513_v14  ;;  %2095 = vmatprep.subr.mxu1 %v5698_v3 }
  0x3c   : > { %2096 = vmatpush1.msra.mxu1 %v5704_v5  ;;  %2159 = vmatprep.mubr.f32.mxu1 %v6492_v0 }
  0x3d   : > { %5517 = vmatmul.mubr.msk.f32.vlgmr.msra.gmra.mrb[20].mxu0 %vm236_vm0, %v5516_v15  ;;  %2204 = vmatprep.subr.mxu0 %v5696_v2 }
  0x3e   : > { %2205 = vmatpush1.msra.mxu0 %v5700_v4  ;;  %2268 = vmatprep.mubr.f32.mxu0 %v6492_v0 }
  0x3f   : > { %5518 = vmatmul.mubr.msk.f32.vlgmr.msra.gmra.mrb[20].mxu1 %vm236_vm0, %v5516_v15  ;;  %2275 = vmatprep.subr.mxu1 %v5698_v3 }
  0x40   : > { %2276 = vmatpush1.msra.mxu1 %v5704_v5  ;;  %2339 = vmatprep.mubr.f32.mxu1 %v6492_v0 }
  0x41   : > { %5520 = vmatmul.mubr.msk.f32.vlgmr.msra.gmra.mrb[22].mxu0 %vm236_vm0, %v5519_v16  ;;  %2384 = vmatprep.subr.mxu0 %v5696_v2 }
  0x42   : > { %2385 = vmatpush1.msra.mxu0 %v5700_v4  ;;  %2448 = vmatprep.mubr.f32.mxu0 %v6492_v0 }
  0x43   : > { %5521 = vmatmul.mubr.msk.f32.vlgmr.msra.gmra.mrb[22].mxu1 %vm236_vm0, %v5519_v16  ;;  %2455 = vmatprep.subr.mxu1 %v5698_v3 }
  0x44   : > { %2456 = vmatpush1.msra.mxu1 %v5704_v5  ;;  %2519 = vmatprep.mubr.f32.mxu1 %v6492_v0 }
  0x45   : > { %5523 = vmatmul.mubr.msk.f32.vlgmr.msra.gmra.mrb[24].mxu0 %vm236_vm0, %v5522_v17  ;;  %2564 = vmatprep.subr.mxu0 %v5696_v2 }
  0x46   : > { %2565 = vmatpush1.msra.mxu0 %v5700_v4  ;;  %2628 = vmatprep.mubr.f32.mxu0 %v6492_v0 }
  0x47   : > { %5524 = vmatmul.mubr.msk.f32.vlgmr.msra.gmra.mrb[24].mxu1 %vm236_vm0, %v5522_v17  ;;  %2635 = vmatprep.subr.mxu1 %v5698_v3 }
  0x48   : > { %2744 = vmatprep.subr.mxu0 %v5696_v2  ;;  %2636 = vmatpush1.msra.mxu1 %v5704_v5 }
  0x49   : > { %5526 = vmatmul.mubr.msk.f32.vlgmr.msra.gmra.mrb[26].mxu0 %vm236_vm0, %v5525_v18  ;;  %2699 = vmatprep.mubr.f32.mxu1 %v6492_v0 }
  0x4a   : > { %2745 = vmatpush1.msra.mxu0 %v5700_v4  ;;  %2808 = vmatprep.mubr.f32.mxu0 %v6492_v0 }
  0x4b   : > { %5527 = vmatmul.mubr.msk.f32.vlgmr.msra.gmra.mrb[26].mxu1 %vm236_vm0, %v5525_v18  ;;  %2815 = vmatprep.subr.mxu1 %v5698_v3 }
  0x4c   : > { %2903 = vmatprep.subr.mxu0 %v5696_v2  ;;  %2816 = vmatpush1.msra.mxu1 %v5704_v5 }
  0x4d   : > { %5529 = vmatmul.mubr.msk.f32.vlgmr.msra.gmra.mrb[28].mxu0 %vm236_vm0, %v5528_v19  ;;  %2879 = vmatprep.mubr.f32.mxu1 %v6492_v0 }
  0x4e   : > { %2904 = vmatpush1.msra.mxu0 %v5700_v4  ;;  %2967 = vmatprep.mubr.f32.mxu0 %v6492_v0 }
  0x4f   : > { %5530 = vmatmul.mubr.msk.f32.vlgmr.msra.gmra.mrb[28].mxu1 %vm236_vm0, %v5528_v19  ;;  %2974 = vmatprep.subr.mxu1 %v5698_v3 }
  0x50   : > { %2975 = vmatpush1.msra.mxu1 %v5704_v5  ;;  %3038 = vmatprep.mubr.f32.mxu1 %v6492_v0 }
  0x51   : > { %5532 = vmatmul.mubr.msk.f32.vlgmr.msra.gmra.mrb[30].mxu0 %vm236_vm0, %v5531_v20  ;;  %3083 = vmatprep.subr.mxu0 %v5696_v2 }
  0x52   : > { %3084 = vmatpush1.msra.mxu0 %v5700_v4  ;;  %3147 = vmatprep.mubr.f32.mxu0 %v6492_v0 }
  0x53   : > { %5533 = vmatmul.mubr.msk.f32.vlgmr.msra.gmra.mrb[30].mxu1 %vm236_vm0, %v5531_v20  ;;  %3154 = vmatprep.subr.mxu1 %v5698_v3 }
  0x54   : > { %3155 = vmatpush1.msra.mxu1 %v5704_v5  ;;  %3218 = vmatprep.mubr.f32.mxu1 %v6492_v0 }
  0x55   : > { %5535 = vmatmul.mubr.msk.f32.vlgmr.msra.gmra.mrb[32].mxu0 %vm236_vm0, %v5534_v21  ;;  %3263 = vmatprep.subr.mxu0 %v5696_v2 }
  0x56   : > { %3264 = vmatpush1.msra.mxu0 %v5700_v4  ;;  %3327 = vmatprep.mubr.f32.mxu0 %v6492_v0 }
  0x57   : > { %5536 = vmatmul.mubr.msk.f32.vlgmr.msra.gmra.mrb[32].mxu1 %vm236_vm0, %v5534_v21  ;;  %3334 = vmatprep.subr.mxu1 %v5698_v3 }
  0x58   : > { %3335 = vmatpush1.msra.mxu1 %v5704_v5  ;;  %3398 = vmatprep.mubr.f32.mxu1 %v6492_v0 }
  0x59   : > { %5538 = vmatmul.mubr.msk.f32.vlgmr.msra.gmra.mrb[34].mxu0 %vm236_vm0, %v5537_v22  ;;  %3443 = vmatprep.subr.mxu0 %v5696_v2 }
  0x5a   : > { %3444 = vmatpush1.msra.mxu0 %v5700_v4  ;;  %3507 = vmatprep.mubr.f32.mxu0 %v6492_v0 }
  0x5b   : > { %5539 = vmatmul.mubr.msk.f32.vlgmr.msra.gmra.mrb[34].mxu1 %vm236_vm0, %v5537_v22  ;;  %3514 = vmatprep.subr.mxu1 %v5698_v3 }
  0x5c   : > { %3515 = vmatpush1.msra.mxu1 %v5704_v5  ;;  %3578 = vmatprep.mubr.f32.mxu1 %v6492_v0 }
  0x5d   : > { %5541 = vmatmul.mubr.msk.f32.vlgmr.msra.gmra.mrb[36].mxu0 %vm236_vm0, %v5540_v23  ;;  %3649 = vmatprep.subr.mxu0 %v5696_v2 }
  0x5e   : > { %3650 = vmatpush1.msra.mxu0 %v5700_v4  ;;  %3713 = vmatprep.mubr.f32.mxu0 %v6492_v0 }
  0x5f   : > { %5542 = vmatmul.mubr.msk.f32.vlgmr.msra.gmra.mrb[36].mxu1 %vm236_vm0, %v5540_v23  ;;  %3720 = vmatprep.subr.mxu1 %v5698_v3 }
  0x60   : > { %3721 = vmatpush1.msra.mxu1 %v5704_v5  ;;  %3784 = vmatprep.mubr.f32.mxu1 %v6492_v0 }
  0x61   : > { %5544 = vmatmul.mubr.msk.f32.vlgmr.msra.gmra.mrb[38].mxu0 %vm236_vm0, %v5543_v24  ;;  %3829 = vmatprep.subr.mxu0 %v5696_v2 }
  0x62   : > { %3830 = vmatpush1.msra.mxu0 %v5700_v4  ;;  %3893 = vmatprep.mubr.f32.mxu0 %v6492_v0 }
  0x63   : > { %5545 = vmatmul.mubr.msk.f32.vlgmr.msra.gmra.mrb[38].mxu1 %vm236_vm0, %v5543_v24  ;;  %3900 = vmatprep.subr.mxu1 %v5698_v3  ;;  %v5627_v24 = vmov 0  }
  0x64   : > { %3901 = vmatpush1.msra.mxu1 %v5704_v5  ;;  %3964 = vmatprep.mubr.f32.mxu1 %v6492_v0 }
  0x65   : > { %5547 = vmatmul.mubr.msk.f32.vlgmr.msra.gmra.mrb[40].mxu0 %vm236_vm0, %v5546_v25  ;;  %4009 = vmatprep.subr.mxu0 %v5696_v2 }
  0x66   : > { %4010 = vmatpush1.msra.mxu0 %v5700_v4  ;;  %4073 = vmatprep.mubr.f32.mxu0 %v6492_v0 }
  0x67   : > { %5548 = vmatmul.mubr.msk.f32.vlgmr.msra.gmra.mrb[40].mxu1 %vm236_vm0, %v5546_v25  ;;  %4080 = vmatprep.subr.mxu1 %v5698_v3 }
  0x68   : > { %4081 = vmatpush1.msra.mxu1 %v5704_v5  ;;  %4144 = vmatprep.mubr.f32.mxu1 %v6492_v0 }
  0x69   : > { %5550 = vmatmul.mubr.msk.f32.vlgmr.msra.gmra.mrb[42].mxu0 %vm236_vm0, %v5549_v26  ;;  %4189 = vmatprep.subr.mxu0 %v5696_v2 }
  0x6a   : > { %4190 = vmatpush1.msra.mxu0 %v5700_v4  ;;  %4253 = vmatprep.mubr.f32.mxu0 %v6492_v0 }
  0x6b   : > { %5551 = vmatmul.mubr.msk.f32.vlgmr.msra.gmra.mrb[42].mxu1 %vm236_vm0, %v5549_v26  ;;  %4260 = vmatprep.subr.mxu1 %v5698_v3 }
  0x6c   : > { %4369 = vmatprep.subr.mxu0 %v5696_v2  ;;  %4261 = vmatpush1.msra.mxu1 %v5704_v5 }
  0x6d   : > { %5553 = vmatmul.mubr.msk.f32.vlgmr.msra.gmra.mrb[44].mxu0 %vm236_vm0, %v5552_v27  ;;  %4324 = vmatprep.mubr.f32.mxu1 %v6492_v0 }
  0x6e   : > { %4370 = vmatpush1.msra.mxu0 %v5700_v4  ;;  %4433 = vmatprep.mubr.f32.mxu0 %v6492_v0 }
  0x6f   : > { %5554 = vmatmul.mubr.msk.f32.vlgmr.msra.gmra.mrb[44].mxu1 %vm236_vm0, %v5552_v27  ;;  %4440 = vmatprep.subr.mxu1 %v5698_v3 }
  0x70   : > { %4528 = vmatprep.subr.mxu0 %v5696_v2  ;;  %4441 = vmatpush1.msra.mxu1 %v5704_v5 }
  0x71   : > { %5556 = vmatmul.mubr.msk.f32.vlgmr.msra.gmra.mrb[46].mxu0 %vm236_vm0, %v5555_v28  ;;  %4504 = vmatprep.mubr.f32.mxu1 %v6492_v0 }
  0x72   : > { %4529 = vmatpush1.msra.mxu0 %v5700_v4  ;;  %4592 = vmatprep.mubr.f32.mxu0 %v6492_v0 }
  0x73   : > { %5557 = vmatmul.mubr.msk.f32.vlgmr.msra.gmra.mrb[46].mxu1 %vm236_vm0, %v5555_v28  ;;  %4599 = vmatprep.subr.mxu1 %v5698_v3 }
  0x74   : > { %4600 = vmatpush1.msra.mxu1 %v5704_v5  ;;  %4663 = vmatprep.mubr.f32.mxu1 %v6492_v0 }
  0x75   : > { %5559 = vmatmul.mubr.msk.f32.vlgmr.msra.gmra.mrb[48].mxu0 %vm236_vm0, %v5558_v29  ;;  %4708 = vmatprep.subr.mxu0 %v5696_v2 }
  0x76   : > { %4709 = vmatpush1.msra.mxu0 %v5700_v4  ;;  %4772 = vmatprep.mubr.f32.mxu0 %v6492_v0 }
  0x77   : > { %5560 = vmatmul.mubr.msk.f32.vlgmr.msra.gmra.mrb[48].mxu1 %vm236_vm0, %v5558_v29  ;;  %4779 = vmatprep.subr.mxu1 %v5698_v3 }
  0x78   : > { %4780 = vmatpush1.msra.mxu1 %v5704_v5  ;;  %4843 = vmatprep.mubr.f32.mxu1 %v6492_v0 }
  0x79   : > { %5562 = vmatmul.mubr.msk.f32.vlgmr.msra.gmra.mrb[50].mxu0 %vm236_vm0, %v5561_v30  ;;  %4888 = vmatprep.subr.mxu0 %v5696_v2 }
  0x7a   : > { %4889 = vmatpush1.msra.mxu0 %v5700_v4  ;;  %4952 = vmatprep.mubr.f32.mxu0 %v6492_v0 }
  0x7b   : > { %5563 = vmatmul.mubr.msk.f32.vlgmr.msra.gmra.mrb[50].mxu1 %vm236_vm0, %v5561_v30  ;;  %4959 = vmatprep.subr.mxu1 %v5698_v3 }
  0x7c   : > { %4960 = vmatpush1.msra.mxu1 %v5704_v5  ;;  %5023 = vmatprep.mubr.f32.mxu1 %v6492_v0 }
  0x7d   : > { %5565 = vmatmul.mubr.msk.f32.vlgmr.msra.gmra.mrb[52].mxu0 %vm236_vm0, %v5564_v31  ;;  %5068 = vmatprep.subr.mxu0 %v5696_v2 }
  0x7e   : > { %5069 = vmatpush1.msra.mxu0 %v5700_v4  ;;  %5132 = vmatprep.mubr.f32.mxu0 %v6492_v0 }
  0x7f   : > { %5566 = vmatmul.mubr.msk.f32.vlgmr.msra.gmra.mrb[52].mxu1 %vm236_vm0, %v5564_v31  ;;  %5139 = vmatprep.subr.mxu1 %v5698_v3 }
  0x80   : > { %5140 = vmatpush1.msra.mxu1 %v5704_v5  ;;  %5203 = vmatprep.mubr.f32.mxu1 %v6492_v0 }
  0x81   : > { %5568 = vmatmul.mubr.msk.f32.vlgmr.msra.gmra.mrb[54].mxu0 %vm236_vm0, %v5567_v32  ;;  %5275 = vmatprep.subr.mxu0 %v5696_v2 }
  0x82   : > { %5346 = vmatprep.subr.mxu1 %v5698_v3  ;;  %5276 = vmatpush1.msra.mxu0 %v5700_v4 }
  0x83   : > { %5569 = vmatmul.mubr.msk.f32.vlgmr.msra.gmra.mrb[54].mxu1 %vm236_vm0, %v5567_v32  ;;  %5339 = vmatprep.mubr.f32.mxu0 %v6492_v0 }
  0x84   : > { %5347 = vmatpush1.msra.mxu1 %v5704_v5  ;;  %5410 = vmatprep.mubr.f32.mxu1 %v6492_v0 }
  0x85   : > { %5570 = vmatmul.mubr.msk.f32.vlgmr.msra.gmra.mrb[56].mxu0 %vm236_vm0, %v5265_v8  ;;  %5611 = vset.pattern.permute.xlu1 %v5627_v24 }
  0x86   : > { %5610 = vset.pattern.permute.xlu0 %v5627_v24 }
  0x87   : > { %5571 = vmatmul.mubr.msk.f32.vlgmr.msra.gmra.mrb[56].mxu1 %vm236_vm0, %v5265_v8  ;;  %vm2194_vm0 = vcmask 1047920  }
  0xe8   : > { %v6015_v33 = vpop.f32.mrb[0].mxu0  ;;  %v6017_v34 = vpop.f32.mrb[0].mxu1 }
  0xe9   : > { %v6019_v35 = vpop.f32.mrb[1].mxu0  ;;  %v6021_v36 = vpop.f32.mrb[1].mxu1 }
  0xec   : > { %v465_v37 = vpop.f32.mrb[2].mxu0  ;;  %v536_v38 = vpop.f32.mrb[2].mxu1 }
  0xed   : > { %553 = vrot.lane.b32.xlu1 %v536_v38, %s5621_s9  ;;  %v538_v39 = vpop.f32.mrb[3].mxu1  ;;  %549 = vrot.lane.b32.xlu0 %v465_v37, %s5621_s9  ;;  %v467_v40 = vpop.f32.mrb[3].mxu0 }
  0xf0   : > { %v645_v41 = vpop.f32.mrb[4].mxu0  ;;  %v716_v42 = vpop.f32.mrb[4].mxu1 }
  0xf1   : > { %555 = vrot.lane.b32.xlu1 %v538_v39, %s5621_s9  ;;  %551 = vrot.lane.b32.xlu0 %v467_v40, %s5621_s9  ;;  %v647_v43 = vpop.f32.mrb[5].mxu0  ;;  %v718_v44 = vpop.f32.mrb[5].mxu1  ;;  %s5643_s9 = smov 65  }
  0xf4   : > { %v825_v45 = vpop.f32.mrb[6].mxu0  ;;  %v896_v46 = vpop.f32.mrb[6].mxu1 }
  0xf5   : > { %729 = vrot.lane.b32.xlu0 %v645_v41, %s5622_s10  ;;  %731 = vrot.lane.b32.xlu1 %v647_v43, %s5622_s10  ;;  %v827_v47 = vpop.f32.mrb[7].mxu0  ;;  %v898_v48 = vpop.f32.mrb[7].mxu1 }
  0xf8   : > { %v1005_v49 = vpop.f32.mrb[8].mxu0 }
  0xf9   : > { %733 = vrot.lane.b32.xlu0 %v716_v42, %s5622_s10  ;;  %735 = vrot.lane.b32.xlu1 %v718_v44, %s5622_s10  ;;  %v1007_v50 = vpop.f32.mrb[9].mxu0 }
  0xfa   : > { %v1076_v51 = vpop.f32.mrb[8].mxu1 }
  0xfb   : > { %v1078_v52 = vpop.f32.mrb[9].mxu1 }
  0xfc   : > { %v6023_v53 = vpop.f32.mrb[10].mxu0 }
  0xfd   : > { %909 = vrot.lane.b32.xlu0 %v825_v45, %s5623_s11  ;;  %911 = vrot.lane.b32.xlu1 %v827_v47, %s5623_s11  ;;  %v6025_v54 = vpop.f32.mrb[11].mxu0 }
  0xfe   : > { %v6027_v55 = vpop.f32.mrb[10].mxu1 }
  0xff   : > { %v6029_v56 = vpop.f32.mrb[11].mxu1 }
 0x100   : > { %v1344_v57 = vpop.f32.mrb[12].mxu0 }
 0x101   : > { %913 = vrot.lane.b32.xlu0 %v896_v46, %s5623_s11  ;;  %915 = vrot.lane.b32.xlu1 %v898_v48, %s5623_s11  ;;  %v1346_v58 = vpop.f32.mrb[13].mxu0 }
 0x102   : > { %v1415_v59 = vpop.f32.mrb[12].mxu1 }
 0x103   : > { %v1417_v60 = vpop.f32.mrb[13].mxu1 }
 0x104   : > { %v1524_v61 = vpop.f32.mrb[14].mxu0 }
 0x105   : > { %1089 = vrot.lane.b32.xlu0 %v1005_v49, %s5624_s12  ;;  %1091 = vrot.lane.b32.xlu1 %v1007_v50, %s5624_s12  ;;  %v1526_v62 = vpop.f32.mrb[15].mxu0 }
 0x106   : > { %v1595_v63 = vpop.f32.mrb[14].mxu1 }
 0x107   : > { %v1597_v1 = vpop.f32.mrb[15].mxu1 }
 0x108   : > { %v1704_v2 = vpop.f32.mrb[16].mxu0 }
 0x109   : > { %1093 = vrot.lane.b32.xlu0 %v1076_v51, %s5624_s12  ;;  %1095 = vrot.lane.b32.xlu1 %v1078_v52, %s5624_s12  ;;  %v1706_v3 = vpop.f32.mrb[17].mxu0  ;;  %s5644_s12 = smov 62  }
 0x10a   : > { %v1775_v4 = vpop.f32.mrb[16].mxu1 }
 0x10b   : > { %v1777_v5 = vpop.f32.mrb[17].mxu1 }
 0x10c   : > { %v1884_v6 = vpop.f32.mrb[18].mxu0 }
 0x10d   : > { %1428 = vrot.lane.b32.xlu0 %v1344_v57, %s5625_s13  ;;  %1430 = vrot.lane.b32.xlu1 %v1346_v58, %s5625_s13  ;;  %v1886_v7 = vpop.f32.mrb[19].mxu0 }
 0x10e   : > { %v1955_v9 = vpop.f32.mrb[18].mxu1 }
 0x10f   : > { %v1957_v10 = vpop.f32.mrb[19].mxu1 }
 0x110   : > { %v2090_v11 = vpop.f32.mrb[20].mxu0 }
 0x111   : > { %1432 = vrot.lane.b32.xlu0 %v1415_v59, %s5625_s13  ;;  %1434 = vrot.lane.b32.xlu1 %v1417_v60, %s5625_s13  ;;  %v2092_v12 = vpop.f32.mrb[21].mxu0 }
 0x112   : > { %v2161_v13 = vpop.f32.mrb[20].mxu1 }
 0x113   : > { %v2163_v14 = vpop.f32.mrb[21].mxu1 }
 0x114   : > { %v2270_v15 = vpop.f32.mrb[22].mxu0 }
 0x115   : > { %1608 = vrot.lane.b32.xlu0 %v1524_v61, %s5626_s16  ;;  %1610 = vrot.lane.b32.xlu1 %v1526_v62, %s5626_s16  ;;  %v2272_v16 = vpop.f32.mrb[23].mxu0 }
 0x116   : > { %v2341_v17 = vpop.f32.mrb[22].mxu1 }
 0x117   : > { %v2343_v18 = vpop.f32.mrb[23].mxu1 }
 0x118   : > { %v2450_v19 = vpop.f32.mrb[24].mxu0 }
 0x119   : > { %1612 = vrot.lane.b32.xlu0 %v1595_v63, %s5626_s16  ;;  %1614 = vrot.lane.b32.xlu1 %v1597_v1, %s5626_s16  ;;  %v2452_v20 = vpop.f32.mrb[25].mxu0 }
 0x11a   : > { %v6036_v21 = vpop.f32.mrb[24].mxu1 }
 0x11b   : > { %v6038_v22 = vpop.f32.mrb[25].mxu1 }
 0x11c   : > { %v6040_v23 = vpop.f32.mrb[26].mxu0 }
 0x11d   : > { %1788 = vrot.lane.b32.xlu0 %v1704_v2, %s5628_s17  ;;  %1790 = vrot.lane.b32.xlu1 %v1706_v3, %s5628_s17  ;;  %v6042_v25 = vpop.f32.mrb[27].mxu0 }
 0x11e   : > { %v6044_v26 = vpop.f32.mrb[26].mxu1 }
 0x11f   : > { %v6046_v27 = vpop.f32.mrb[27].mxu1 }
 0x120   : > { %v6048_v28 = vpop.f32.mrb[28].mxu0 }
 0x121   : > { %1792 = vrot.lane.b32.xlu0 %v1775_v4, %s5628_s17  ;;  %1794 = vrot.lane.b32.xlu1 %v1777_v5, %s5628_s17  ;;  %v6050_v29 = vpop.f32.mrb[29].mxu0  ;;  %s5645_s17 = smov 59  }
 0x122   : > { %v6052_v30 = vpop.f32.mrb[28].mxu1 }
 0x123   : > { %v6054_v31 = vpop.f32.mrb[29].mxu1 }
 0x124   : > { %v6056_v32 = vpop.f32.mrb[30].mxu0 }
 0x125   : > { %1968 = vrot.lane.b32.xlu0 %v1884_v6, %s5629_s20  ;;  %1970 = vrot.lane.b32.xlu1 %v1886_v7, %s5629_s20  ;;  %v6058_v37 = vpop.f32.mrb[31].mxu0 }
 0x126   : > { %v6060_v38 = vpop.f32.mrb[30].mxu1 }
 0x127   : > { %v6062_v39 = vpop.f32.mrb[31].mxu1 }
 0x128   : > { %v6064_v40 = vpop.f32.mrb[32].mxu0 }
 0x129   : > { %1972 = vrot.lane.b32.xlu0 %v1955_v9, %s5629_s20  ;;  %1974 = vrot.lane.b32.xlu1 %v1957_v10, %s5629_s20  ;;  %v6066_v41 = vpop.f32.mrb[33].mxu0 }
 0x12a   : > { %v6068_v42 = vpop.f32.mrb[32].mxu1 }
 0x12b   : > { %v6070_v43 = vpop.f32.mrb[33].mxu1 }
 0x12c   : > { %v6072_v44 = vpop.f32.mrb[34].mxu0 }
 0x12d   : > { %2174 = vrot.lane.b32.xlu0 %v2090_v11, %s5630_s21  ;;  %2176 = vrot.lane.b32.xlu1 %v2092_v12, %s5630_s21  ;;  %v6074_v45 = vpop.f32.mrb[35].mxu0 }
 0x12e   : > { %v6076_v46 = vpop.f32.mrb[34].mxu1 }
 0x12f   : > { %v6078_v47 = vpop.f32.mrb[35].mxu1 }
 0x130   : > { %v6080_v48 = vpop.f32.mrb[36].mxu0 }
 0x131   : > { %2178 = vrot.lane.b32.xlu0 %v2161_v13, %s5630_s21  ;;  %2180 = vrot.lane.b32.xlu1 %v2163_v14, %s5630_s21  ;;  %v6082_v49 = vpop.f32.mrb[37].mxu0 }
 0x132   : > { %v6084_v50 = vpop.f32.mrb[36].mxu1 }
 0x133   : > { %v6086_v51 = vpop.f32.mrb[37].mxu1 }
 0x134   : > { %v6088_v52 = vpop.f32.mrb[38].mxu0 }
 0x135   : > { %2354 = vrot.lane.b32.xlu0 %v2270_v15, %s5631_s22  ;;  %2356 = vrot.lane.b32.xlu1 %v2272_v16, %s5631_s22  ;;  %v6090_v57 = vpop.f32.mrb[39].mxu0 }
 0x136   : > { %v6092_v58 = vpop.f32.mrb[38].mxu1 }
 0x137   : > { %v6094_v59 = vpop.f32.mrb[39].mxu1 }
 0x138   : > { %v6096_v60 = vpop.f32.mrb[40].mxu0 }
 0x139   : > { %2358 = vrot.lane.b32.xlu0 %v2341_v17, %s5631_s22  ;;  %2360 = vrot.lane.b32.xlu1 %v2343_v18, %s5631_s22  ;;  %v6098_v61 = vpop.f32.mrb[41].mxu0 }
 0x13a   : > { %v6100_v62 = vpop.f32.mrb[40].mxu1 }
 0x13b   : > { %v6102_v63 = vpop.f32.mrb[41].mxu1 }
 0x13c   : > { %v6104_v1 = vpop.f32.mrb[42].mxu0 }
 0x13d   : > { %2534 = vrot.lane.b32.xlu0 %v2450_v19, %s5632_s23  ;;  %2536 = vrot.lane.b32.xlu1 %v2452_v20, %s5632_s23  ;;  %v6106_v2 = vpop.f32.mrb[43].mxu0 }
 0x13e   : > { %v6108_v3 = vpop.f32.mrb[42].mxu1 }
 0x13f   : > { %v6110_v4 = vpop.f32.mrb[43].mxu1 }
 0x140   : > { %v6112_v5 = vpop.f32.mrb[44].mxu0 }
 0x141   : > { %2538 = vrot.lane.b32.xlu0 %v6036_v21, %s5632_s23  ;;  %2540 = vrot.lane.b32.xlu1 %v6038_v22, %s5632_s23  ;;  %v6116_v6 = vpop.f32.mrb[45].mxu0 }
 0x142   : > { %v6118_v7 = vpop.f32.mrb[44].mxu1 }
 0x143   : > { %v6120_v8 = vpop.f32.mrb[45].mxu1 }
 0x144   : > { %v6122_v9 = vpop.f32.mrb[46].mxu0 }
 0x145   : > { %2714 = vrot.lane.b32.xlu0 %v6040_v23, %s5633_s24  ;;  %2716 = vrot.lane.b32.xlu1 %v6042_v25, %s5633_s24  ;;  %v6126_v10 = vpop.f32.mrb[47].mxu0 }
 0x146   : > { %v6128_v11 = vpop.f32.mrb[46].mxu1 }
 0x147   : > { %6494 = vst [vmem:[#allocation3_spill] sm:$0xff] %v6128_v11  ;;  %v6130_v12 = vpop.f32.mrb[47].mxu1 }
 0x148   : > { %6495 = vst [vmem:[#allocation4_spill] sm:$0xff] %v6130_v12  ;;  %v6132_v13 = vpop.f32.mrb[48].mxu0 }
 0x149   : > { %2718 = vrot.lane.b32.xlu0 %v6044_v26, %s5633_s24  ;;  %2720 = vrot.lane.b32.xlu1 %v6046_v27, %s5633_s24  ;;  %v6136_v14 = vpop.f32.mrb[49].mxu0  ;;  %s5575_s24 = smul.u32 160, %s6500_s19 }
 0x14a   : > { %v6138_v15 = vpop.f32.mrb[48].mxu1 }
 0x14b   : > { %v6140_v16 = vpop.f32.mrb[49].mxu1 }
 0x14c   : > { %v6142_v17 = vpop.f32.mrb[50].mxu0 }
 0x14d   : > { %3053 = vrot.lane.b32.xlu0 %v6056_v32, %s5634_s25  ;;  %3055 = vrot.lane.b32.xlu1 %v6058_v37, %s5634_s25  ;;  %v6146_v18 = vpop.f32.mrb[51].mxu0 }
 0x14e   : > { %v6148_v19 = vpop.f32.mrb[50].mxu1 }
 0x14f   : > { %v6150_v20 = vpop.f32.mrb[51].mxu1 }
 0x150   : > { %v6152_v21 = vpop.f32.mrb[52].mxu0 }
 0x151   : > { %3057 = vrot.lane.b32.xlu0 %v6060_v38, %s5634_s25  ;;  %3059 = vrot.lane.b32.xlu1 %v6062_v39, %s5634_s25  ;;  %v6156_v22 = vpop.f32.mrb[53].mxu0  ;;  %v544_v39 = vld [vmem:[#allocation2 + $0x18] sm:$0xff] }
 0x152   : > { %v6158_v23 = vpop.f32.mrb[52].mxu1 }
 0x153   : > { %v6160_v24 = vpop.f32.mrb[53].mxu1 }
 0x154   : > { %v6162_v25 = vpop.f32.mrb[54].mxu0 }
 0x155   : > { %3233 = vrot.lane.b32.xlu0 %v6064_v40, %s5635_s26  ;;  %3235 = vrot.lane.b32.xlu1 %v6066_v41, %s5635_s26  ;;  %v6166_v26 = vpop.f32.mrb[55].mxu0 }
 0x156   : > { %v6168_v27 = vpop.f32.mrb[54].mxu1 }
 0x157   : > { %v6170_v32 = vpop.f32.mrb[55].mxu1 }
 0x159   : > { %3237 = vrot.lane.b32.xlu0 %v6068_v42, %s5635_s26  ;;  %3239 = vrot.lane.b32.xlu1 %v6070_v43, %s5635_s26  ;;  %s6390_s26 = scalar_lea.vmem %s6491_s5, %s5575_s24 }
 0x15d   : > { %3413 = vrot.lane.b32.xlu0 %v6072_v44, %s5636_s27  ;;  %3415 = vrot.lane.b32.xlu1 %v6074_v45, %s5636_s27 }
 0x15f   : > { %v554_v37 = vpop.permute.xlu1 %553  ;;  %v550_v38 = vpop.permute.xlu0 %549 }
 0x160   : > { %570 = vst.msk [vmem:[#allocation2] sm:$0xff] %vm569_vm2, %v550_v38  ;;  %vm1631_vm2 = vcmask 646144  }
 0x161   : > { %3417 = vrot.lane.b32.xlu0 %v6076_v46, %s5636_s27  ;;  %3419 = vrot.lane.b32.xlu1 %v6078_v47, %s5636_s27 }
 0x163   : > { %v556_v40 = vpop.permute.xlu1 %555  ;;  %v552_v41 = vpop.permute.xlu0 %551 }
 0x164   : > { %v560_v42 = vsel %vm557_vm3, %v554_v37, %v556_v40  ;;  %v558_v0 = vsel %vm557_vm3, %v550_v38, %v552_v41  ;;  %v559_v43 = vsel %vm557_vm3, %v552_v41, %v554_v37  ;;  %vm2362_vm3 = vcmask 359424  }
 0x165   : > { %v568_v12 = vadd.f32 %v560_v42, %v544_v39  ;;  %3593 = vrot.lane.b32.xlu0 %v6080_v48, %s5637_s28  ;;  %3595 = vrot.lane.b32.xlu1 %v6082_v49, %s5637_s28 }
 0x167   : > { %573 = vst.msk [vmem:[#allocation2 + $0x18] sm:$0xff] %vm389_vm1, %v568_v12  ;;  %v730_v44 = vpop.permute.xlu0 %729  ;;  %v732_v45 = vpop.permute.xlu1 %731  ;;  %v721_v47 = vld [vmem:[#allocation2] sm:$0xff] }
 0x168   : > { %v738_v46 = vsel %vm737_vm4, %v730_v44, %v732_v45  ;;  %v745_v37 = vadd.f32 %v730_v44, %v721_v47 }
 0x169   : > { %v746_v11 = vadd.f32 %v738_v46, %v558_v0  ;;  %3597 = vrot.lane.b32.xlu0 %v6084_v50, %s5637_s28  ;;  %3599 = vrot.lane.b32.xlu1 %v6086_v51, %s5637_s28 }
 0x16a   : > { %750 = vst.msk [vmem:[#allocation2] sm:$0xff] %vm749_vm5, %v745_v37  ;;  %vm1811_vm5 = vcmask 637952  }
 0x16b   : > { %v734_v38 = vpop.permute.xlu0 %733  ;;  %v736_v39 = vpop.permute.xlu1 %735 }
 0x16c   : > { %v739_v48 = vsel %vm737_vm4, %v732_v45, %v734_v38  ;;  %v740_v40 = vsel %vm737_vm4, %v734_v38, %v736_v39  ;;  %vm2374_vm4 = vcmask 1047904  }
 0x16d   : > { %v747_v49 = vadd.f32 %v739_v48, %v559_v43  ;;  %3799 = vrot.lane.b32.xlu0 %v6088_v52, %s5638_s29  ;;  %3801 = vrot.lane.b32.xlu1 %v6090_v57, %s5638_s29 }
 0x16e   : > { %v724_v12 = vld [vmem:[#allocation2 + $0x18] sm:$0xff] }
 0x16f   : > { %v748_v41 = vadd.f32 %v740_v40, %v724_v12  ;;  %v910_v0 = vpop.permute.xlu0 %909  ;;  %v912_v42 = vpop.permute.xlu1 %911 }
 0x170   : > { %v918_v50 = vsel %vm917_vm6, %v910_v0, %v912_v42 }
 0x171   : > { %753 = vst.msk [vmem:[#allocation2 + $0x18] sm:$0xff] %vm389_vm1, %v748_v41  ;;  %3803 = vrot.lane.b32.xlu0 %v6092_v58, %s5638_s29  ;;  %3805 = vrot.lane.b32.xlu1 %v6094_v59, %s5638_s29  ;;  %v926_v51 = vadd.f32 %v918_v50, %v746_v11  ;;  %v901_v43 = vld [vmem:[#allocation2] sm:$0xff] }
 0x172   : > { %v925_v45 = vadd.f32 %v910_v0, %v901_v43 }
 0x173   : > { %v914_v44 = vpop.permute.xlu0 %913  ;;  %v916_v52 = vpop.permute.xlu1 %915 }
 0x174   : > { %v919_v57 = vsel %vm917_vm6, %v912_v42, %v914_v44  ;;  %930 = vst.msk [vmem:[#allocation2] sm:$0xff] %vm929_vm7, %v925_v45  ;;  %v920_v58 = vsel %vm917_vm6, %v914_v44, %v916_v52  ;;  %vm2542_vm6 = vcmask 343040   ;;  %vm2554_vm7 = vcmask 1047888  }
 0x175   : > { %v927_v46 = vadd.f32 %v919_v57, %v747_v49  ;;  %3979 = vrot.lane.b32.xlu0 %v6096_v60, %s5639_s30  ;;  %3981 = vrot.lane.b32.xlu1 %v6098_v61, %s5639_s30 }
 0x177   : > { %v1090_v47 = vpop.permute.xlu0 %1089  ;;  %v1092_v59 = vpop.permute.xlu1 %1091 }
 0x178   : > { %v904_v11 = vld [vmem:[#allocation2 + $0x18] sm:$0xff]  ;;  %v1098_v37 = vsel %vm1097_vm8, %v1090_v47, %v1092_v59 }
 0x179   : > { %v928_v38 = vadd.f32 %v920_v58, %v904_v11  ;;  %3983 = vrot.lane.b32.xlu0 %v6100_v62, %s5639_s30  ;;  %3985 = vrot.lane.b32.xlu1 %v6102_v63, %s5639_s30  ;;  %v1106_v39 = vadd.f32 %v1098_v37, %v926_v51  ;;  %v6496_v58 = vmov 0.0  }
 0x17b   : > { %933 = vst.msk [vmem:[#allocation2 + $0x18] sm:$0xff] %vm389_vm1, %v928_v38  ;;  %v1094_v60 = vpop.permute.xlu0 %1093  ;;  %v1266_v61 = vadd.f32 %v6025_v54, %v1106_v39  ;;  %v1096_v48 = vpop.permute.xlu1 %1095  ;;  %v1081_v49 = vld [vmem:[#allocation2] sm:$0xff] }
 0x17c   : > { %v1099_v40 = vsel %vm1097_vm8, %v1092_v59, %v1094_v60  ;;  %v1105_v62 = vadd.f32 %v1090_v47, %v1081_v49  ;;  %v1100_v54 = vsel %vm1097_vm8, %v1094_v60, %v1096_v48  ;;  %vm1991_vm8 = vcmask 629760  }
 0x17d   : > { %v1107_v12 = vadd.f32 %v1099_v40, %v927_v46  ;;  %4159 = vrot.lane.b32.xlu0 %v6104_v1, %s5640_s6  ;;  %4161 = vrot.lane.b32.xlu1 %v6106_v2, %s5640_s6 }
 0x17e   : > { %1110 = vst.msk [vmem:[#allocation2] sm:$0xff] %vm1109_vm9, %v1105_v62  ;;  %vm2722_vm9 = vcmask 15360  }
 0x17f   : > { %v1267_v63 = vadd.f32 %v6027_v55, %v1107_v12  ;;  %v1429_v41 = vpop.permute.xlu0 %1428  ;;  %v1431_v0 = vpop.permute.xlu1 %1430 }
 0x180   : > { %v1437_v42 = vsel %vm1436_vm10, %v1429_v41, %v1431_v0 }
 0x181   : > { %4163 = vrot.lane.b32.xlu0 %v6108_v3, %s5640_s6  ;;  %4165 = vrot.lane.b32.xlu1 %v6110_v4, %s5640_s6 }
 0x182   : > { %v1084_v50 = vld [vmem:[#allocation2 + $0x18] sm:$0xff] }
 0x183   : > { %v1108_v51 = vadd.f32 %v1100_v54, %v1084_v50  ;;  %v1433_v43 = vpop.permute.xlu0 %1432  ;;  %v1435_v1 = vpop.permute.xlu1 %1434 }
 0x184   : > { %v1438_v44 = vsel %vm1436_vm10, %v1431_v0, %v1433_v43  ;;  %v1439_v2 = vsel %vm1436_vm10, %v1433_v43, %v1435_v1  ;;  %vm2734_vm10 = vcmask 1047568  }
 0x185   : > { %1113 = vst.msk [vmem:[#allocation2 + $0x18] sm:$0xff] %vm389_vm1, %v1108_v51  ;;  %4339 = vrot.lane.b32.xlu0 %v6112_v5, %s5641_s7  ;;  %4341 = vrot.lane.b32.xlu1 %v6116_v6, %s5641_s7  ;;  %v1445_v55 = vadd.f32 %v1438_v44, %v1266_v61  ;;  %v1446_v52 = vadd.f32 %v1439_v2, %v1267_v63  ;;  %v1261_v45 = vld [vmem:[#allocation2] sm:$0xff] }
 0x186   : > { %v1265_v4 = vadd.f32 %v1261_v45, %v6023_v53  ;;  %2015 = vst [vmem:[#allocation2] sm:$0xff] %v6496_v58 }
 0x187   : > { %v1609_v3 = vpop.permute.xlu0 %1608  ;;  %v1611_v57 = vpop.permute.xlu1 %1610 }
 0x188   : > { %v1617_v46 = vsel %vm1616_vm11, %v1609_v3, %v1611_v57  ;;  %v1444_v47 = vadd.f32 %v1437_v42, %v1265_v4 }
 0x189   : > { %4343 = vrot.lane.b32.xlu0 %v6118_v7, %s5641_s7  ;;  %4345 = vrot.lane.b32.xlu1 %v6120_v8, %s5641_s7 }
 0x18a   : > { %v1624_v6 = vadd.f32 %v1617_v46, %v1444_v47 }
 0x18b   : > { %v1613_v59 = vpop.permute.xlu0 %1612  ;;  %v1615_v5 = vpop.permute.xlu1 %1614 }
 0x18c   : > { %v1264_v11 = vld [vmem:[#allocation2 + $0x18] sm:$0xff]  ;;  %v1618_v37 = vsel %vm1616_vm11, %v1611_v57, %v1613_v59  ;;  %v1619_v38 = vsel %vm1616_vm11, %v1613_v59, %v1615_v5  ;;  %vm3061_vm11 = vcmask 1031168  }
 0x18d   : > { %4678 = vrot.lane.b32.xlu0 %v6132_v13, %s5642_s8  ;;  %4680 = vrot.lane.b32.xlu1 %v6136_v14, %s5642_s8  ;;  %v1268_v53 = vadd.f32 %v1264_v11, %v6029_v56  ;;  %v1625_v39 = vadd.f32 %v1618_v37, %v1445_v55  ;;  %v1626_v60 = vadd.f32 %v1619_v38, %v1446_v52 }
 0x18f   : > { %1272 = vst.msk [vmem:[#allocation2 + $0x18] sm:$0xff] %vm389_vm1, %v1268_v53  ;;  %v1789_v7 = vpop.permute.xlu0 %1788  ;;  %v1791_v8 = vpop.permute.xlu1 %1790 }
 0x190   : > { %v1797_v61 = vsel %vm1796_vm12, %v1789_v7, %v1791_v8  ;;  %v5266_v7 = vld [vmem:[%s6490_s4 + $0x20] sm:$0xff] }
 0x191   : > { %4682 = vrot.lane.b32.xlu0 %v6138_v15, %s5642_s8  ;;  %4684 = vrot.lane.b32.xlu1 %v6140_v16, %s5642_s8  ;;  %v1804_v48 = vadd.f32 %v1797_v61, %v1624_v6 }
 0x193   : > { %v1793_v40 = vpop.permute.xlu0 %1792  ;;  %v1795_v49 = vpop.permute.xlu1 %1794 }
 0x194   : > { %v1798_v13 = vsel %vm1796_vm12, %v1791_v8, %v1793_v40  ;;  %v1799_v12 = vsel %vm1796_vm12, %v1793_v40, %v1795_v49  ;;  %vm3241_vm12 = vcmask 703488  }
 0x195   : > { %4858 = vrot.lane.b32.xlu0 %v6142_v17, %s5643_s9  ;;  %4860 = vrot.lane.b32.xlu1 %v6146_v18, %s5643_s9  ;;  %v1805_v56 = vadd.f32 %v1798_v13, %v1625_v39  ;;  %v1806_v14 = vadd.f32 %v1799_v12, %v1626_v60  ;;  %v1997_v17 = vld [vmem:[%s6490_s4 + $0x8] sm:$0xff] }
 0x196   : > { %v1423_v62 = vld [vmem:[#allocation2 + $0x18] sm:$0xff] }
 0x197   : > { %v1447_v63 = vadd.f32 %v1435_v1, %v1423_v62  ;;  %v1969_v41 = vpop.permute.xlu0 %1968  ;;  %v1971_v15 = vpop.permute.xlu1 %1970 }
 0x198   : > { %v1977_v0 = vsel %vm1976_vm13, %v1969_v41, %v1971_v15 }
 0x199   : > { %1452 = vst.msk [vmem:[#allocation2 + $0x18] sm:$0xff] %vm1451_vm14, %v1447_v63  ;;  %4862 = vrot.lane.b32.xlu0 %v6148_v19, %s5643_s9  ;;  %4864 = vrot.lane.b32.xlu1 %v6150_v20, %s5643_s9  ;;  %v6222_v16 = vadd.f32 %v1977_v0, %v1804_v48  ;;  %vm3601_vm14 = vcmask 670720  }
 0x19b   : > { %v1973_v18 = vpop.permute.xlu0 %1972  ;;  %v6227_v54 = vpop.permute.xlu1 %1974 }
 0x19c   : > { %v1978_v42 = vsel %vm1976_vm13, %v1971_v15, %v1973_v18  ;;  %v1979_v50 = vsel %vm1976_vm13, %v1973_v18, %v6227_v54  ;;  %vm3421_vm13 = vcmask 687104  }
 0x19d   : > { %2000 = vperm.xlu1 %5611, %v1997_v17   ;;  %5038 = vrot.lane.b32.xlu0 %v6152_v21, %s5644_s12  ;;  %v6231_v51 = vadd.f32 %v1978_v42, %v1805_v56  ;;  %v6233_v19 = vadd.f32 %v1979_v50, %v1806_v14  ;;  %v230_v21 = vld [vmem:[%s6490_s4] sm:$0xff] }
 0x19f   : > { %v2175_v20 = vpop.permute.xlu0 %2174  ;;  %v2177_v43 = vpop.permute.xlu1 %2176 }
 0x1a0   : > { %v1603_v1 = vld [vmem:[#allocation2 + $0x18] sm:$0xff]  ;;  %v2183_v44 = vsel %vm2182_vm15, %v2175_v20, %v2177_v43  ;;  %2195 = vst.msk [vmem:[#allocation2] sm:$0xff] %vm2194_vm0, %v2175_v20  ;;  %vm3999_vm0 = vcmask 1048080  }
 0x1a1   : > { %v1627_v2 = vadd.f32 %v1615_v5, %v1603_v1  ;;  %5042 = vrot.lane.b32.xlu0 %v6158_v23, %s5644_s12  ;;  %5040 = vrot.lane.b32.xlu1 %v6156_v22, %s5644_s12  ;;  %v3622_v22 = vld [vmem:[%s6490_s4 + $0x10] sm:$0xff] }
 0x1a3   : > { %1632 = vst.msk [vmem:[#allocation2 + $0x18] sm:$0xff] %vm1631_vm2, %v1627_v2  ;;  %v6241_v55 = vpop.permute.xlu0 %2178  ;;  %v6243_v52 = vpop.permute.xlu1 %2180  ;;  %vm4179_vm2 = vcmask 1048056  }
 0x1a4   : > { %v2184_v45 = vsel %vm2182_vm15, %v2177_v43, %v6241_v55 }
 0x1a5   : > { %233 = vperm.xlu0 %5610, %v230_v21   ;;  %5044 = vrot.lane.b32.xlu1 %v6160_v24, %s5644_s12 }
 0x1a7   : > { %v2355_v23 = vpop.permute.xlu0 %2354  ;;  %v2357_v3 = vpop.permute.xlu1 %2356  ;;  %v2346_v4 = vld [vmem:[#allocation2] sm:$0xff] }
 0x1a8   : > { %v2363_v57 = vsel %vm2362_vm3, %v2355_v23, %v2357_v3  ;;  %v2370_v59 = vadd.f32 %v2355_v23, %v2346_v4 }
 0x1a9   : > { %3625 = vperm.xlu1 %5611, %v3622_v22   ;;  %v2371_v46 = vadd.f32 %v2363_v57, %v2183_v44  ;;  %5218 = vrot.lane.b32.xlu0 %v6162_v25, %s5645_s17  ;;  %v5247_v25 = vld [vmem:[%s6490_s4 + $0x18] sm:$0xff]  ;;  %v2185_v44 = vsel %vm2182_vm15, %v6241_v55, %v6243_v52  ;;  %vm3819_vm15 = vcmask 1048104  }
 0x1aa   : > { %v1783_v47 = vld [vmem:[#allocation2 + $0x18] sm:$0xff]  ;;  %2375 = vst.msk [vmem:[#allocation2] sm:$0xff] %vm2374_vm4, %v2370_v59  ;;  %vm4359_vm4 = vcmask 1047576  }
 0x1ab   : > { %v1807_v24 = vadd.f32 %v1795_v49, %v1783_v47  ;;  %v6253_v5 = vpop.permute.xlu0 %2358  ;;  %v6255_v11 = vpop.permute.xlu1 %2360 }
 0x1ac   : > { %v2364_v6 = vsel %vm2362_vm3, %v2357_v3, %v6253_v5 }
 0x1ad   : > { %1812 = vst.msk [vmem:[#allocation2 + $0x18] sm:$0xff] %vm1811_vm5, %v1807_v24  ;;  %v2372_v37 = vadd.f32 %v2364_v6, %v2184_v45  ;;  %5220 = vrot.lane.b32.xlu1 %v6166_v26, %s5645_s17  ;;  %5222 = vrot.lane.b32.xlu0 %v6168_v27, %s5645_s17  ;;  %vm3256_vm5 = vcmask 474112  }
 0x1af   : > { %v2535_v38 = vpop.permute.xlu0 %2534  ;;  %v2537_v53 = vpop.permute.xlu1 %2536 }
 0x1b0   : > { %v2543_v39 = vsel %vm2542_vm6, %v2535_v38, %v2537_v53 }
 0x1b1   : > { %v2551_v60 = vadd.f32 %v2543_v39, %v2371_v46  ;;  %5224 = vrot.lane.b32.xlu1 %v6170_v32, %s5645_s17  ;;  %5250 = vperm.xlu0 %5610, %v5247_v25   ;;  %v2526_v8 = vld [vmem:[#allocation2] sm:$0xff] }
 0x1b2   : > { %v2550_v48 = vadd.f32 %v2535_v38, %v2526_v8 }
 0x1b3   : > { %v6269_v26 = vpop.permute.xlu0 %2538  ;;  %v6271_v27 = vpop.permute.xlu1 %2540 }
 0x1b4   : > { %v1963_v61 = vld [vmem:[#allocation2 + $0x18] sm:$0xff]  ;;  %v2544_v40 = vsel %vm2542_vm6, %v2537_v53, %v6269_v26  ;;  %2555 = vst.msk [vmem:[#allocation2] sm:$0xff] %vm2554_vm7, %v2550_v48  ;;  %vm3807_vm7 = vcmask 564224  }
 0x1b5   : > { %v1987_v49 = vadd.f32 %v6227_v54, %v1963_v61  ;;  %v2552_v32 = vadd.f32 %v2544_v40, %v2372_v37  ;;  %5269 = vperm.xlu1 %5611, %v5266_v7  }
 0x1b7   : > { %1992 = vst.msk [vmem:[#allocation2 + $0x18] sm:$0xff] %vm1991_vm8, %v1987_v49  ;;  %v2715_v13 = vpop.permute.xlu0 %2714  ;;  %v2717_v12 = vpop.permute.xlu1 %2716  ;;  %vm3987_vm8 = vcmask 539648  }
 0x1b8   : > { %v2723_v56 = vsel %vm2722_vm9, %v2715_v13, %v2717_v12 }
 0x1b9   : > { %v2731_v14 = vadd.f32 %v2723_v56, %v2551_v60 }
 0x1bb   : > { %v6277_v62 = vpop.permute.xlu0 %2718  ;;  %v6279_v63 = vpop.permute.xlu1 %2720  ;;  %v2891_v41 = vadd.f32 %v6050_v29, %v2731_v14  ;;  %v2706_v0 = vld [vmem:[#allocation2] sm:$0xff] }
 0x1bc   : > { %v2724_v15 = vsel %vm2722_vm9, %v2717_v12, %v6277_v62  ;;  %v2730_v54 = vadd.f32 %v2715_v13, %v2706_v0 }
 0x1bd   : > { %v2732_v17 = vadd.f32 %v2724_v15, %v2552_v32 }
 0x1be   : > { %v6284_v18 = vld [vmem:[#allocation2 + $0x18] sm:$0xff]  ;;  %2735 = vst.msk [vmem:[#allocation2] sm:$0xff] %vm2734_vm10, %v2730_v54  ;;  %vm4167_vm10 = vcmask 515072  }
 0x1bf   : > { %2018 = vst.msk [vmem:[#allocation2 + $0x18] sm:$0xff] %vm389_vm1, %v6496_v58  ;;  %v3054_v42 = vpop.permute.xlu0 %3053  ;;  %v3056_v50 = vpop.permute.xlu1 %3055  ;;  %v2892_v20 = vadd.f32 %v6052_v30, %v2732_v17 }
 0x1c0   : > { %v3062_v43 = vsel %vm3061_vm11, %v3054_v42, %v3056_v50 }
 0x1c3   : > { %v3058_v29 = vpop.permute.xlu0 %3057  ;;  %v6289_v1 = vpop.permute.xlu1 %3059 }
 0x1c4   : > { %v3063_v2 = vsel %vm3061_vm11, %v3056_v50, %v3058_v29  ;;  %v3064_v21 = vsel %vm3061_vm11, %v3058_v29, %v6289_v1  ;;  %vm4347_vm11 = vcmask 23552  }
 0x1c5   : > { %v3070_v45 = vadd.f32 %v3063_v2, %v2891_v41  ;;  %v3071_v22 = vadd.f32 %v3064_v21, %v2892_v20  ;;  %v2886_v57 = vld [vmem:[#allocation2] sm:$0xff] }
 0x1c6   : > { %v2169_v23 = vld [vmem:[#allocation2 + $0x18] sm:$0xff]  ;;  %v2890_v46 = vadd.f32 %v2886_v57, %v6048_v28  ;;  %3640 = vst [vmem:[#allocation2] sm:$0xff] %v6496_v58  ;;  %v2365_v28 = vsel %vm2362_vm3, %v6253_v5, %v6255_v11  ;;  %v2545_v5 = vsel %vm2542_vm6, %v6269_v26, %v6271_v27  ;;  %v2725_v27 = vsel %vm2722_vm9, %v6277_v62, %v6279_v63 }
 0x1c7   : > { %v2193_v3 = vadd.f32 %v2185_v44, %v2169_v23  ;;  %v3234_v4 = vpop.permute.xlu0 %3233  ;;  %v3236_v30 = vpop.permute.xlu1 %3235  ;;  %vm3076_vm3 = vcmask 801792   ;;  %vm3436_vm6 = vcmask 457728   ;;  %vm3616_vm9 = vcmask 441344  }
 0x1c8   : > { %v3242_v47 = vsel %vm3241_vm12, %v3234_v4, %v3236_v30  ;;  %v3069_v59 = vadd.f32 %v3062_v43, %v2890_v46  ;;  %v6332_v23 = vpop.f32.mrb[56].mxu1 }
 0x1c9   : > { %2198 = vst.msk [vmem:[#allocation2 + $0x18] sm:$0xff] %vm389_vm1, %v2193_v3  ;;  %v6334_v3 = vpop.f32.mrb[57].mxu1 }
 0x1ca   : > { %v3249_v24 = vadd.f32 %v3242_v47, %v3069_v59 }
 0x1cb   : > { %v3238_v55 = vpop.permute.xlu0 %3237  ;;  %v6298_v52 = vpop.permute.xlu1 %3239 }
 0x1cc   : > { %v3243_v6 = vsel %vm3241_vm12, %v3236_v30, %v3238_v55  ;;  %v3244_v37 = vsel %vm3241_vm12, %v3238_v55, %v6298_v52  ;;  %vm4686_vm12 = vcmask 1022976  }
 0x1cd   : > { %v3250_v25 = vadd.f32 %v3243_v6, %v3070_v45  ;;  %v3251_v38 = vadd.f32 %v3244_v37, %v3071_v22  ;;  %v6330_v22 = vpop.f32.mrb[56].mxu0 }
 0x1ce   : > { %v6336_v57 = vpop.f32.mrb[57].mxu0 }
 0x1cf   : > { %v3414_v53 = vpop.permute.xlu0 %3413  ;;  %v3416_v39 = vpop.permute.xlu1 %3415 }
 0x1d0   : > { %v2349_v60 = vld [vmem:[#allocation2 + $0x18] sm:$0xff]  ;;  %v3422_v7 = vsel %vm3421_vm13, %v3414_v53, %v3416_v39 }
 0x1d1   : > { %v2373_v8 = vadd.f32 %v2365_v28, %v2349_v60  ;;  %v3429_v61 = vadd.f32 %v3422_v7, %v3249_v24 }
 0x1d3   : > { %2378 = vst.msk [vmem:[#allocation2 + $0x18] sm:$0xff] %vm389_vm1, %v2373_v8  ;;  %v3418_v48 = vpop.permute.xlu0 %3417  ;;  %v6305_v40 = vpop.permute.xlu1 %3419 }
 0x1d4   : > { %v3423_v49 = vsel %vm3421_vm13, %v3416_v39, %v3418_v48  ;;  %v3424_v32 = vsel %vm3421_vm13, %v3418_v48, %v6305_v40  ;;  %vm4866_vm13 = vcmask 531456  }
 0x1d5   : > { %v3430_v13 = vadd.f32 %v3423_v49, %v3250_v25  ;;  %v3431_v12 = vadd.f32 %v3424_v32, %v3251_v38 }
 0x1d7   : > { %v3594_v56 = vpop.permute.xlu0 %3593  ;;  %v3596_v14 = vpop.permute.xlu1 %3595 }
 0x1d8   : > { %v3602_v11 = vsel %vm3601_vm14, %v3594_v56, %v3596_v14 }
 0x1d9   : > { %v6311_v41 = vadd.f32 %v3602_v11, %v3429_v61 }
 0x1da   : > { %v2529_v15 = vld [vmem:[#allocation2 + $0x18] sm:$0xff] }
 0x1db   : > { %v2553_v0 = vadd.f32 %v2545_v5, %v2529_v15  ;;  %v3598_v17 = vpop.permute.xlu0 %3597  ;;  %v6313_v54 = vpop.permute.xlu1 %3599 }
 0x1dc   : > { %v3603_v42 = vsel %vm3601_vm14, %v3596_v14, %v3598_v17  ;;  %v3604_v50 = vsel %vm3601_vm14, %v3598_v17, %v6313_v54  ;;  %vm5046_vm14 = vcmask 506880  }
 0x1dd   : > { %2558 = vst.msk [vmem:[#allocation2 + $0x18] sm:$0xff] %vm389_vm1, %v2553_v0  ;;  %v6317_v20 = vadd.f32 %v3603_v42, %v3430_v13  ;;  %v6319_v43 = vadd.f32 %v3604_v50, %v3431_v12 }
 0x1df   : > { %v3800_v29 = vpop.permute.xlu0 %3799  ;;  %v6321_v26 = vpop.permute.xlu1 %3801 }
 0x1e0   : > { %3820 = vst.msk [vmem:[#allocation2] sm:$0xff] %vm3819_vm15, %v3800_v29  ;;  %v3808_v15 = vsel %vm3807_vm7, %v3800_v29, %v6321_v26  ;;  %vm5226_vm15 = vcmask 482304  }
 0x1e3   : > { %v6326_v44 = vpop.permute.xlu0 %3803  ;;  %v6328_v2 = vpop.permute.xlu1 %3805 }
 0x1e4   : > { %v2709_v21 = vld [vmem:[#allocation2 + $0x18] sm:$0xff] }
 0x1e5   : > { %v2733_v45 = vadd.f32 %v2725_v27, %v2709_v21 }
 0x1e7   : > { %2738 = vst.msk [vmem:[#allocation2 + $0x18] sm:$0xff] %vm389_vm1, %v2733_v45  ;;  %v3980_v4 = vpop.permute.xlu0 %3979  ;;  %v3982_v30 = vpop.permute.xlu1 %3981  ;;  %v3971_v62 = vld [vmem:[#allocation2] sm:$0xff] }
 0x1e8   : > { %v3995_v63 = vadd.f32 %v3980_v4, %v3971_v62  ;;  %v3988_v17 = vsel %vm3987_vm8, %v3980_v4, %v3982_v30 }
 0x1e9   : > { %v3996_v27 = vadd.f32 %v3988_v17, %v3808_v15 }
 0x1ea   : > { %4000 = vst.msk [vmem:[#allocation2] sm:$0xff] %vm3999_vm0, %v3995_v63  ;;  %vm4701_vm0 = vcmask 793600  }
 0x1eb   : > { %v6339_v46 = vpop.permute.xlu0 %3983  ;;  %v6341_v47 = vpop.permute.xlu1 %3985 }
 0x1ec   : > { %v3989_v4 = vsel %vm3987_vm8, %v3982_v30, %v6339_v46 }
 0x1ee   : > { %v2889_v59 = vld [vmem:[#allocation2 + $0x18] sm:$0xff] }
 0x1ef   : > { %v2893_v55 = vadd.f32 %v2889_v59, %v6054_v31  ;;  %v4160_v24 = vpop.permute.xlu0 %4159  ;;  %v4162_v6 = vpop.permute.xlu1 %4161 }
 0x1f0   : > { %v4168_v45 = vsel %vm4167_vm10, %v4160_v24, %v4162_v6 }
 0x1f1   : > { %2897 = vst.msk [vmem:[#allocation2 + $0x18] sm:$0xff] %vm389_vm1, %v2893_v55  ;;  %v4151_v37 = vld [vmem:[#allocation2] sm:$0xff]  ;;  %v4176_v62 = vadd.f32 %v4168_v45, %v3996_v27 }
 0x1f2   : > { %v4175_v38 = vadd.f32 %v4160_v24, %v4151_v37 }
 0x1f3   : > { %v6345_v25 = vpop.permute.xlu0 %4163  ;;  %v6347_v28 = vpop.permute.xlu1 %4165 }
 0x1f4   : > { %4180 = vst.msk [vmem:[#allocation2] sm:$0xff] %vm4179_vm2, %v4175_v38  ;;  %v4169_v24 = vsel %vm4167_vm10, %v4162_v6, %v6345_v25  ;;  %vm4881_vm2 = vcmask 302080  }
 0x1f7   : > { %v4340_v53 = vpop.permute.xlu0 %4339  ;;  %v6350_v7 = vpop.permute.xlu1 %4341 }
 0x1f8   : > { %v3048_v39 = vld [vmem:[#allocation2 + $0x18] sm:$0xff] }
 0x1f9   : > { %v3072_v60 = vadd.f32 %v6289_v1, %v3048_v39 }
 0x1fb   : > { %3077 = vst.msk [vmem:[#allocation2 + $0x18] sm:$0xff] %vm3076_vm3, %v3072_v60  ;;  %v6352_v31 = vpop.permute.xlu0 %4343  ;;  %v4331_v8 = vld [vmem:[#allocation2] sm:$0xff]  ;;  %v6354_v48 = vpop.permute.xlu1 %4345  ;;  %vm5061_vm3 = vcmask 277504  }
 0x1fc   : > { %v4355_v61 = vadd.f32 %v4340_v53, %v4331_v8 }
 0x1fe   : > { %4360 = vst.msk [vmem:[#allocation2] sm:$0xff] %vm4359_vm4, %v4355_v61  ;;  %vm5241_vm4 = vcmask 252928  }
 0x1ff   : > { %v4679_v32 = vpop.permute.xlu0 %4678  ;;  %v4681_v12 = vpop.permute.xlu1 %4680 }
 0x202   : > { %v3228_v49 = vld [vmem:[#allocation2 + $0x18] sm:$0xff] }
 0x203   : > { %v3252_v13 = vadd.f32 %v6298_v52, %v3228_v49  ;;  %v6357_v56 = vpop.permute.xlu0 %4682  ;;  %v6359_v14 = vpop.permute.xlu1 %4684  ;;  %v4349_v49 = vsel %vm4347_vm11, %v6350_v7, %v6352_v31 }
 0x205   : > { %3257 = vst.msk [vmem:[#allocation2 + $0x18] sm:$0xff] %vm3256_vm5, %v3252_v13  ;;  %v4687_v13 = vsel %vm4686_vm12, %v4679_v32, %v4681_v12 }
 0x207   : > { %v6362_v11 = vpop.permute.xlu0 %4858  ;;  %v4861_v52 = vpop.permute.xlu1 %4860 }
 0x20b   : > { %v6366_v0 = vpop.permute.xlu0 %4862  ;;  %v6373_v21 = vpop.permute.xlu1 %4864 }
 0x20c   : > { %v3408_v1 = vld [vmem:[#allocation2 + $0x18] sm:$0xff] }
 0x20d   : > { %v3432_v5 = vadd.f32 %v6305_v40, %v3408_v1  ;;  %v3809_v40 = vsel %vm3807_vm7, %v6321_v26, %v6326_v44 }
 0x20e   : > { %v3997_v38 = vadd.f32 %v3989_v4, %v3809_v40 }
 0x20f   : > { %3437 = vst.msk [vmem:[#allocation2 + $0x18] sm:$0xff] %vm3436_vm6, %v3432_v5  ;;  %v5039_v29 = vpop.permute.xlu0 %5038  ;;  %v4688_v5 = vsel %vm4686_vm12, %v4681_v12, %v6357_v56 }
 0x210   : > { %v4177_v6 = vadd.f32 %v4169_v24, %v3997_v38  ;;  %v4869_v38 = vsel %vm4866_vm13, %v6366_v0, %v6373_v21 }
 0x216   : > { %v3588_v42 = vld [vmem:[#allocation2 + $0x18] sm:$0xff] }
 0x217   : > { %v3612_v50 = vadd.f32 %v6313_v54, %v3588_v42  ;;  %v4348_v54 = vsel %vm4347_vm11, %v4340_v53, %v6350_v7 }
 0x218   : > { %v4356_v60 = vadd.f32 %v4348_v54, %v4176_v62 }
 0x219   : > { %3617 = vst.msk [vmem:[#allocation2 + $0x18] sm:$0xff] %vm3616_vm9, %v3612_v50  ;;  %v4357_v50 = vadd.f32 %v4349_v49, %v4177_v6  ;;  %v3990_v49 = vsel %vm3987_vm8, %v6339_v46, %v6341_v47 }
 0x21a   : > { %v4516_v1 = vadd.f32 %v6126_v10, %v4356_v60  ;;  %v4867_v10 = vsel %vm4866_vm13, %v6362_v11, %v4861_v52 }
 0x21c   : > { %v2001_v63 = vpop.permute.xlu1 %2000 }
 0x21d   : > { %v2003_v59 = vadd.f32 %v2001_v63, %v6222_v16  ;;  %v2004_v26 = vadd.f32 %v2001_v63, %v6231_v51  ;;  %v2005_v55 = vadd.f32 %v2001_v63, %v6233_v19  ;;  %v2006_v37 = vadd.f32 %v2001_v63, %v6284_v18  ;;  %v6392_v16 = vpop.permute.xlu0 %5042  ;;  %v4511_v51 = vld [vmem:[#allocation2] sm:$0xff] }
 0x21e   : > { %v4515_v61 = vadd.f32 %v4511_v51, %v6122_v9 }
 0x21f   : > { %v2007_v30 = vmax.f32 %v2003_v59, 0.0  ;;  %v2008_v19 = vmax.f32 %v2004_v26, 0.0  ;;  %v2009_v53 = vmax.f32 %v2005_v55, 0.0  ;;  %v2010_v18 = vmax.f32 %v2006_v37, 0.0 }
 0x220   : > { %v3621_v39 = vld [vmem:[#allocation2 + $0x18] sm:$0xff]  ;;  %v5041_v8 = vpop.permute.xlu1 %5040 }
 0x221   : > { %3643 = vst.msk [vmem:[#allocation2 + $0x18] sm:$0xff] %vm389_vm1, %v6496_v58  ;;  %2011 = vst [vmem:[%s6390_s26 + $0x20] sm:$0xff] %v2007_v30  ;;  %v3810_v58 = vsel %vm3807_vm7, %v6326_v44, %v6328_v2  ;;  %v4694_v44 = vadd.f32 %v4687_v13, %v4515_v61  ;;  %v4868_v2 = vsel %vm4866_vm13, %v4861_v52, %v6366_v0 }
 0x222   : > { %2012 = vst [vmem:[%s6390_s26 + $0x28] sm:$0xff] %v2008_v19  ;;  %2013 = vst [vmem:[%s6390_s26 + $0x30] sm:$0xff] %v2009_v53  ;;  %v5047_v45 = vsel %vm5046_vm14, %v5039_v29, %v5041_v8  ;;  %v5048_v11 = vsel %vm5046_vm14, %v5041_v8, %v6392_v16 }
 0x223   : > { %2014 = vst.msk [vmem:[%s6390_s26 + $0x38] sm:$0xff] %vm389_vm1, %v2010_v18  ;;  %v4874_v29 = vadd.f32 %v4867_v10, %v4694_v44 }
 0x224   : > { %v234_v15 = vpop.permute.xlu0 %233  ;;  %v6412_v17 = vpop.permute.xlu1 %5044 }
 0x225   : > { %v307_v9 = vadd.f32 %v6015_v33, %v234_v15  ;;  %v309_v7 = vadd.f32 %v6019_v35, %v234_v15  ;;  %v378_v32 = vadd.f32 %v6017_v34, %v234_v15  ;;  %v380_v42 = vadd.f32 %v6021_v36, %v234_v15 }
 0x226   : > { %v4695_v34 = vadd.f32 %v4688_v5, %v4516_v1  ;;  %v4689_v36 = vsel %vm4686_vm12, %v6357_v56, %v6359_v14  ;;  %v6497_v56 = vld [vmem:[#allocation3_spill] sm:$0xff] }
 0x227   : > { %v382_v12 = vmax.f32 %v307_v9, 0.0  ;;  %v383_v33 = vmax.f32 %v309_v7, 0.0  ;;  %v384_v40 = vmax.f32 %v378_v32, 0.0  ;;  %v385_v35 = vmax.f32 %v380_v42, 0.0 }
 0x228   : > { %v3794_v27 = vld [vmem:[#allocation2 + $0x18] sm:$0xff]  ;;  %v3626_v4 = vpop.permute.xlu1 %3625  ;;  %v5219_v62 = vpop.permute.xlu0 %5218  ;;  %v4517_v26 = vadd.f32 %v6497_v56, %v4357_v50  ;;  %v4875_v55 = vadd.f32 %v4868_v2, %v4695_v34 }
 0x229   : > { %v3818_v54 = vadd.f32 %v3810_v58, %v3794_v27  ;;  %386 = vst [vmem:[%s6390_s26] sm:$0xff] %v382_v12  ;;  %387 = vst [vmem:[%s6390_s26 + $0x8] sm:$0xff] %v383_v33  ;;  %v3628_v52 = vadd.f32 %v3626_v4, %v6311_v41  ;;  %v3629_v63 = vadd.f32 %v3626_v4, %v6317_v20 }
 0x22a   : > { %388 = vst [vmem:[%s6390_s26 + $0x10] sm:$0xff] %v384_v40  ;;  %390 = vst.msk [vmem:[%s6390_s26 + $0x18] sm:$0xff] %vm389_vm1, %v385_v35  ;;  %v3630_v59 = vadd.f32 %v3626_v4, %v6319_v43  ;;  %v3631_v37 = vadd.f32 %v3626_v4, %v3621_v39  ;;  %v4696_v51 = vadd.f32 %v4689_v36, %v4517_v26  ;;  %v6498_v4 = vld [vmem:[#allocation4_spill] sm:$0xff] }
 0x22b   : > { %3823 = vst.msk [vmem:[#allocation2 + $0x18] sm:$0xff] %vm389_vm1, %v3818_v54  ;;  %v3632_v24 = vmax.f32 %v3628_v52, 0.0  ;;  %v3633_v41 = vmax.f32 %v3629_v63, 0.0  ;;  %v5054_v43 = vadd.f32 %v5047_v45, %v4874_v29  ;;  %v5055_v30 = vadd.f32 %v5048_v11, %v4875_v55 }
 0x22c   : > { %v3634_v20 = vmax.f32 %v3630_v59, 0.0  ;;  %v3635_v19 = vmax.f32 %v3631_v37, 0.0  ;;  %v5221_v53 = vpop.permute.xlu1 %5220  ;;  %v5223_v18 = vpop.permute.xlu0 %5222  ;;  %v5049_v39 = vsel %vm5046_vm14, %v6392_v16, %v6412_v17  ;;  %v4876_v8 = vadd.f32 %v4869_v38, %v4696_v51 }
 0x22d   : > { %3636 = vst [vmem:[%s6390_s26 + $0x40] sm:$0xff] %v3632_v24  ;;  %3637 = vst [vmem:[%s6390_s26 + $0x48] sm:$0xff] %v3633_v41  ;;  %v5227_v60 = vsel %vm5226_vm15, %v5219_v62, %v5221_v53  ;;  %v5228_v0 = vsel %vm5226_vm15, %v5221_v53, %v5223_v18  ;;  %v4350_v36 = vsel %vm4347_vm11, %v6352_v31, %v6354_v48 }
 0x22e   : > { %3638 = vst [vmem:[%s6390_s26 + $0x50] sm:$0xff] %v3634_v20  ;;  %3639 = vst.msk [vmem:[%s6390_s26 + $0x58] sm:$0xff] %vm389_vm1, %v3635_v19  ;;  %v5234_v6 = vadd.f32 %v5227_v60, %v5054_v43  ;;  %v5235_v61 = vadd.f32 %v5228_v0, %v5055_v30  ;;  %v5056_v13 = vadd.f32 %v5049_v39, %v4876_v8 }
 0x230   : > { %v5225_v58 = vpop.permute.xlu1 %5224  ;;  %5238 = vst [vmem:[#allocation2] sm:$0xff] %v5234_v6  ;;  %v5251_v16 = vpop.permute.xlu0 %5250 }
 0x231   : > { %v5229_v1 = vsel %vm5226_vm15, %v5223_v18, %v5225_v58  ;;  %v5253_v5 = vadd.f32 %v5251_v16, %v5234_v6  ;;  %v5254_v15 = vadd.f32 %v5251_v16, %v5235_v61 }
 0x232   : > { %v3974_v9 = vld [vmem:[#allocation2 + $0x18] sm:$0xff]  ;;  %v5236_v7 = vadd.f32 %v5229_v1, %v5056_v13 }
 0x233   : > { %v3998_v32 = vadd.f32 %v3990_v49, %v3974_v9  ;;  %v5257_v42 = vmax.f32 %v5253_v5, 0.0  ;;  %v5258_v50 = vmax.f32 %v5254_v15, 0.0 }
 0x234   : > { %v5270_v44 = vpop.permute.xlu1 %5269  ;;  %v5255_v46 = vadd.f32 %v5251_v16, %v5236_v7 }
 0x235   : > { %4003 = vst.msk [vmem:[#allocation2 + $0x18] sm:$0xff] %vm389_vm1, %v3998_v32  ;;  %v5342_v47 = vadd.f32 %v6330_v22, %v5270_v44  ;;  %v5413_v10 = vadd.f32 %v6332_v23, %v5270_v44  ;;  %v5415_v2 = vadd.f32 %v6334_v3, %v5270_v44  ;;  %v5344_v12 = vadd.f32 %v6336_v57, %v5270_v44 }
 0x236   : > { %5261 = vst [vmem:[%s6390_s26 + $0x60] sm:$0xff] %v5257_v42  ;;  %5262 = vst [vmem:[%s6390_s26 + $0x68] sm:$0xff] %v5258_v50  ;;  %v5259_v33 = vmax.f32 %v5255_v46, 0.0  ;;  %v4170_v22 = vsel %vm4167_vm10, %v6345_v25, %v6347_v28 }
 0x237   : > { %v5417_v40 = vmax.f32 %v5342_v47, 0.0  ;;  %v5419_v35 = vmax.f32 %v5413_v10, 0.0  ;;  %v5420_v27 = vmax.f32 %v5415_v2, 0.0  ;;  %v5418_v34 = vmax.f32 %v5344_v12, 0.0 }
 0x238   : > { %5263 = vst [vmem:[%s6390_s26 + $0x70] sm:$0xff] %v5259_v33 }
 0x239   : > { %5421 = vst [vmem:[%s6390_s26 + $0x80] sm:$0xff] %v5417_v40  ;;  %5423 = vst [vmem:[%s6390_s26 + $0x90] sm:$0xff] %v5419_v35 }
 0x23a   : > { %5424 = vst.msk [vmem:[%s6390_s26 + $0x98] sm:$0xff] %vm389_vm1, %v5420_v27  ;;  %5422 = vst [vmem:[%s6390_s26 + $0x88] sm:$0xff] %v5418_v34 }
 0x23c   : > { %v4154_v23 = vld [vmem:[#allocation2 + $0x18] sm:$0xff] }
 0x23d   : > { %v4178_v3 = vadd.f32 %v4170_v22, %v4154_v23 }
 0x23f   : > { %4183 = vst.msk [vmem:[#allocation2 + $0x18] sm:$0xff] %vm389_vm1, %v4178_v3 }
 0x246   : > { %v4334_v57 = vld [vmem:[#allocation2 + $0x18] sm:$0xff] }
 0x247   : > { %v4358_v45 = vadd.f32 %v4350_v36, %v4334_v57 }
 0x249   : > { %4363 = vst.msk [vmem:[#allocation2 + $0x18] sm:$0xff] %vm389_vm1, %v4358_v45 }
 0x250   : > { %v4514_v11 = vld [vmem:[#allocation2 + $0x18] sm:$0xff] }
 0x251   : > { %v4518_v62 = vadd.f32 %v4514_v11, %v6498_v4 }
 0x253   : > { %4522 = vst.msk [vmem:[#allocation2 + $0x18] sm:$0xff] %vm389_vm1, %v4518_v62 }
 0x25a   : > { %v4673_v54 = vld [vmem:[#allocation2 + $0x18] sm:$0xff] }
 0x25b   : > { %v4697_v25 = vadd.f32 %v6359_v14, %v4673_v54 }
 0x25d   : > { %4702 = vst.msk [vmem:[#allocation2 + $0x18] sm:$0xff] %vm4701_vm0, %v4697_v25 }
 0x264   : > { %v4853_v28 = vld [vmem:[#allocation2 + $0x18] sm:$0xff] }
 0x265   : > { %v4877_v52 = vadd.f32 %v6373_v21, %v4853_v28 }
 0x267   : > { %4882 = vst.msk [vmem:[#allocation2 + $0x18] sm:$0xff] %vm4881_vm2, %v4877_v52 }
 0x26e   : > { %v5033_v31 = vld [vmem:[#allocation2 + $0x18] sm:$0xff] }
 0x26f   : > { %v5057_v48 = vadd.f32 %v6412_v17, %v5033_v31 }
 0x271   : > { %5062 = vst.msk [vmem:[#allocation2 + $0x18] sm:$0xff] %vm5061_vm3, %v5057_v48 }
 0x278   : > { %v5213_v63 = vld [vmem:[#allocation2 + $0x18] sm:$0xff] }
 0x279   : > { %v5237_v59 = vadd.f32 %v5225_v58, %v5213_v63 }
 0x27b   : > { %5242 = vst.msk [vmem:[#allocation2 + $0x18] sm:$0xff] %vm5241_vm4, %v5237_v59 }
 0x282   : > { %v5246_v56 = vld [vmem:[#allocation2 + $0x18] sm:$0xff] }
 0x283   : > { %v5256_v26 = vadd.f32 %v5251_v16, %v5246_v56 }
 0x285   : > { %v5260_v29 = vmax.f32 %v5256_v26, 0.0 }
 0x287   : > { %5264 = vst.msk [vmem:[%s6390_s26 + $0x78] sm:$0xff] %vm389_vm1, %v5260_v29 }
 0x288 PF: > { %s15_s18 = sadd.s32 1, %s5618_s18  }
 0x289   : > { %p12_p4 = scmp.ge.s32.totalorder %s15_s18, 4  }
 0x28b   :  { %14 = sbr.rel (!%p12_p4) target bundleno = 1 (0x1), region = 96 }

</bundles_post_ra>
